<compile_context>
chip_gen: v7x
topology: tpu7x:2x2x1
jax: 0.10.0
libtpu: 0.0.40
codegen_flags: <defaults>
</compile_context>

<pallas_src>
from functools import partial

import jax
import jax.numpy as jnp
from jax import lax
from jax.experimental import pallas as pl
from jax.experimental.pallas import tpu as pltpu

# ---- small synthetic config (real model: img 224, patch 16, D=768, 12 blocks) ----
B = 2              # batch
IN_CH = 3          # channels
IMG = 16           # spatial
PATCH = 8          # patch size -> 2x2 = 4 patches
EMBED = 32         # hidden dim
NUM_HEADS = 4
HEAD_DIM = EMBED // NUM_HEADS
DEPTH = 2          # transformer blocks
MLP_HIDDEN = 4 * EMBED
NUM_PATCHES = (IMG // PATCH) ** 2
NUM_TOKENS = NUM_PATCHES + 1                    # +1 CLS
# TODO(synk): at real ViT-Base scale pad the key/lane axis to a multiple of
# 128 (197 -> 256) so score / PV tiles stay lane-dense on v6e/v7x.
SEQ_PAD = max(8, ((NUM_TOKENS + 7) // 8) * 8)   # pad tokens to sublane multiple
PATCH_DIM = IN_CH * PATCH * PATCH
LN_EPS = 1e-6
# TODO(synk): re-derive per chip at real scale (v7x has 64 MiB VMEM/TC; v5e/v6e
# have 128 MiB and can afford larger seq tiles).
VMEM_LIMIT_BYTES = 32 * 1024 * 1024


# --------------------------- Pallas kernel ----------------------------------

def _layernorm(v, g, b, eps):
    # One-pass statistics: independent sum / sum-of-squares reductions.
    mean = jnp.mean(v, axis=-1, keepdims=True)
    meansq = jnp.mean(v * v, axis=-1, keepdims=True)
    var = meansq - mean * mean
    return (v - mean) * lax.rsqrt(var + eps) * g + b


def vit_kernel(xp_ref, pw_ref, base_ref, kbias_ref,
               ln1_g, ln1_b, wqkv, bqkv, wproj, bproj,
               ln2_g, ln2_b, w1, b1, w2, b2,
               fn_g, fn_b,
               cls_ref, resid_ref, *, num_heads, eps):
    layer = pl.program_id(0)
    Bb, S, D = resid_ref.shape
    hd = D // num_heads

    # ---- depth 0: fused patch-embed + CLS prepend + pos-embed add ----------
    # xp is row-padded (zero row at the CLS slot and at the tail), so the
    # matmul output is already (B, S_pad, D); base_ref carries
    # cls+pos / pos+patch_bias / zeros per row.  One full-tile store.
    @pl.when(layer == 0)
    def _embed():
        xp = xp_ref[...]                                    # (B, S, C*p*p) f32
        tok = jnp.dot(xp.reshape(Bb * S, xp.shape[-1]).astype(jnp.bfloat16),
                      pw_ref[...], preferred_element_type=jnp.float32)
        resid_ref[...] = tok.reshape(Bb, S, D) + base_ref[...]

    # ---- transformer block `layer` (pre-LN) --------------------------------
    x = resid_ref[...]                                      # (B, S, D) f32

    # Attention.
    h = _layernorm(x, ln1_g[0], ln1_b[0], eps)
    qkv = jnp.dot(h.reshape(Bb * S, D).astype(jnp.bfloat16), wqkv[0],
                  preferred_element_type=jnp.float32) + bqkv[0]   # (B*S, 3D)
    kbias = kbias_ref[...]                                  # (1, S) additive mask

    heads = []
    for hh in range(num_heads):
        # Attention scale is folded into the Q columns of wqkv at init.
        q = qkv[:, hh * hd:(hh + 1) * hd].reshape(Bb, S, hd)
        k = qkv[:, D + hh * hd:D + (hh + 1) * hd].reshape(Bb, S, hd)
        v = qkv[:, 2 * D + hh * hd:2 * D + (hh + 1) * hd].reshape(Bb, S, hd)
        s = jnp.einsum('bqf,bkf->bqk', q.astype(jnp.bfloat16),
                       k.astype(jnp.bfloat16),
                       preferred_element_type=jnp.float32) + kbias
        s = s - jnp.max(s, axis=-1, keepdims=True)
        p = jnp.exp(s)
        p = p * pl.reciprocal(jnp.sum(p, axis=-1, keepdims=True), approx=True)
        heads.append(jnp.einsum('bqk,bkf->bqf', p.astype(jnp.bfloat16),
                                v.astype(jnp.bfloat16),
                                preferred_element_type=jnp.float32))
    o = jnp.concatenate(heads, axis=-1)                     # (B, S, D)
    attn = jnp.dot(o.reshape(Bb * S, D).astype(jnp.bfloat16), wproj[0],
                   preferred_element_type=jnp.float32) + bproj[0]
    x = x + attn.reshape(Bb, S, D)

    # MLP.
    # TODO(synk): at real ViT-Base scale on v7x, tile the (D,4D)/(4D,D) MLP
    # weights over an extra 'arbitrary' hidden-dim grid axis with an f32
    # accumulator scratch instead of keeping them fully resident.
    h2 = _layernorm(x, ln2_g[0], ln2_b[0], eps)
    m = jnp.dot(h2.reshape(Bb * S, D).astype(jnp.bfloat16), w1[0],
                preferred_element_type=jnp.float32) + b1[0]
    # GELU (tanh approximation).
    # TODO(synk): timm/PyTorch nn.GELU default is the exact erf-based GELU.
    m = 0.5 * m * (1.0 + jnp.tanh(
        0.7978845608028654 * (m + 0.044715 * (m * m * m))))
    m = jnp.dot(m.astype(jnp.bfloat16), w2[0],
                preferred_element_type=jnp.float32) + b2[0]
    x = x + m.reshape(Bb, S, D)

    resid_ref[...] = x

    # ---- last depth step: final LayerNorm on the selected CLS rows only ----
    @pl.when(layer == pl.num_programs(0) - 1)
    def _final():
        cls_tok = x[:, 0:1, :].reshape(Bb, D)               # x[:, 0, :]
        cls_ref[...] = _layernorm(cls_tok, fn_g[...], fn_b[...], eps)


# --------------------------- wrapper -----------------------------------------

_PER_LAYER_NAMES = ["ln1_g", "ln1_b", "wqkv", "bqkv", "wproj", "bproj",
                    "ln2_g", "ln2_b", "w1", "b1", "w2", "b2"]


def _pinned(shape):
    # Layer-invariant input: constant block index -> DMA'd once.
    n = len(shape)
    return pl.BlockSpec(tuple(shape), lambda l, _n=n: (0,) * _n)


def _per_layer(shape):
    # Stacked (DEPTH, ...) weight: one layer-slice per grid step, pipelined.
    n = len(shape) - 1
    return pl.BlockSpec((1,) + tuple(shape[1:]),
                        lambda l, _n=n: (l,) + (0,) * _n)


@jax.jit
def vit_forward(params, x):
    """x: (B, C, H, W) NCHW float32  ->  (B, EMBED) CLS-token embedding."""
    Bb, C, H, W = x.shape
    p = PATCH
    Hp, Wp = H // p, W // p
    # Patch extraction (equivalent to the stride=p conv): glue reshape.
    xp = (x.reshape(Bb, C, Hp, p, Wp, p)
            .transpose(0, 2, 4, 1, 3, 5)
            .reshape(Bb, Hp * Wp, C * p * p))
    # Zero row at the CLS slot + zero tail rows -> patch matmul output already
    # has the (B, S_pad, D) sequence layout.
    xp_pad = jnp.pad(xp, ((0, 0), (1, SEQ_PAD - NUM_TOKENS), (0, 0)))

    # Additive embed base: row0 = cls + pos0, rows 1..N-1 = pos + patch_bias,
    # padded rows = 0.  (Tiny parameter preprocessing, done once.)
    pos = params["pos_embed"][0]                            # (NUM_TOKENS, D)
    cls_row = params["cls_token"].reshape(1, EMBED)
    base = jnp.concatenate([cls_row + pos[0:1],
                            pos[1:] + params["patch_b"]], axis=0)
    base = jnp.pad(base, ((0, SEQ_PAD - NUM_TOKENS), (0, 0)))   # (S_pad, D)

    # Additive key-padding mask (0 for valid keys, -1e30 for padded keys).
    key_bias = jnp.where(jnp.arange(SEQ_PAD) < NUM_TOKENS,
                         0.0, -1e30).astype(jnp.float32).reshape(1, SEQ_PAD)

    per_layer = [params[n] for n in _PER_LAYER_NAMES]
    kernel = partial(vit_kernel, num_heads=NUM_HEADS, eps=LN_EPS)

    in_specs = ([_pinned(xp_pad.shape), _pinned(params["patch_w"].shape),
                 _pinned(base.shape), _pinned(key_bias.shape)]
                + [_per_layer(w.shape) for w in per_layer]
                + [_pinned(params["norm_g"].shape),
                   _pinned(params["norm_b"].shape)])

    # TODO(synk): at real scale add a leading "parallel" (batch, seq-tile)
    # grid axis so both v7x TensorCores get work; at this toy size one block
    # per depth step minimizes per-step overhead.
    return pl.pallas_call(
        kernel,
        grid=(DEPTH,),
        in_specs=in_specs,
        out_specs=pl.BlockSpec((Bb, EMBED), lambda l: (0, 0)),
        out_shape=jax.ShapeDtypeStruct((Bb, EMBED), jnp.float32),
        scratch_shapes=[pltpu.VMEM((Bb, SEQ_PAD, EMBED), jnp.float32)],
        compiler_params=pltpu.CompilerParams(
            dimension_semantics=("arbitrary",),
            vmem_limit_bytes=VMEM_LIMIT_BYTES),
    )(xp_pad, params["patch_w"], base, key_bias, *per_layer,
      params["norm_g"], params["norm_b"])


# --------------------------- parameter init ----------------------------------

def init_params(key):
    D, Hh, hd, Dh, L = EMBED, NUM_HEADS, HEAD_DIM, MLP_HIDDEN, DEPTH
    keys = iter(jax.random.split(key, 16 + 8 * L))

    def nrm(shape, std=0.02):
        return std * jax.random.normal(next(keys), shape, jnp.float32)

    params = {
        # Conv2d(C, D, kernel=stride=PATCH) weight flattened (C, ph, pw) -> rows.
        "patch_w": nrm((PATCH_DIM, D)).astype(jnp.bfloat16),
        "patch_b": jnp.zeros((1, D), jnp.float32),
        "cls_token": nrm((1, 1, D)),
        "pos_embed": nrm((1, NUM_TOKENS, D)),
        "norm_g": jnp.ones((1, D), jnp.float32),
        "norm_b": jnp.zeros((1, D), jnp.float32),
    }

    scale = float(hd) ** -0.5
    blocks = {n: [] for n in _PER_LAYER_NAMES}
    for _ in range(L):
        # qkv weight (D, 3D): columns ordered [q(heads,hd) | k | v];
        # attention scale folded into the Q columns (and Q bias) at init.
        w_qkv = nrm((D, 3 * D))
        w_qkv = w_qkv.at[:, :D].multiply(scale)
        b_qkv = jnp.zeros((1, 3 * D), jnp.float32)
        b_qkv = b_qkv.at[:, :D].multiply(scale)
        blocks["ln1_g"].append(jnp.ones((1, D), jnp.float32))
        blocks["ln1_b"].append(jnp.zeros((1, D), jnp.float32))
        blocks["wqkv"].append(w_qkv.astype(jnp.bfloat16))
        blocks["bqkv"].append(b_qkv)
        blocks["wproj"].append(nrm((D, D)).astype(jnp.bfloat16))
        blocks["bproj"].append(jnp.zeros((1, D), jnp.float32))
        blocks["ln2_g"].append(jnp.ones((1, D), jnp.float32))
        blocks["ln2_b"].append(jnp.zeros((1, D), jnp.float32))
        blocks["w1"].append(nrm((D, Dh)).astype(jnp.bfloat16))
        blocks["b1"].append(jnp.zeros((1, Dh), jnp.float32))
        blocks["w2"].append(nrm((Dh, D)).astype(jnp.bfloat16))
        blocks["b2"].append(jnp.zeros((1, D), jnp.float32))
    for n, vs in blocks.items():
        params[n] = jnp.stack(vs, axis=0)          # (DEPTH, ...) stacked
    return params


# --------------------------- main ---------------------------------------------

if __name__ == "__main__":
    # TODO(synk): the PyTorch module loads pretrained timm weights; here the
    # parameters are deterministic synthetic values (shapes match the arch).
    k_img, k_par = jax.random.split(jax.random.PRNGKey(0))
    x = jax.random.normal(k_img, (B, IN_CH, IMG, IMG), jnp.float32)
    params = init_params(k_par)

    out = vit_forward(params, x)
    out = jax.block_until_ready(out)
    assert out.shape == (B, EMBED), out.shape
    assert out.dtype == jnp.float32
    assert bool(jnp.all(jnp.isfinite(out)))
    print("KERNEL_OK")
</pallas_src>

<mosaic_0001>
module attributes {stable_mosaic.version = 11 : i64} {
  func.func @vit_kernel(%arg0: i32, %arg1: memref<2x8x192xf32, #tpu.memory_space<vmem>>, %arg2: memref<192x32xbf16, #tpu.memory_space<vmem>>, %arg3: memref<8x32xf32, #tpu.memory_space<vmem>>, %arg4: memref<1x8xf32, #tpu.memory_space<vmem>>, %arg5: memref<1x1x32xf32, #tpu.memory_space<vmem>>, %arg6: memref<1x1x32xf32, #tpu.memory_space<vmem>>, %arg7: memref<1x32x96xbf16, #tpu.memory_space<vmem>>, %arg8: memref<1x1x96xf32, #tpu.memory_space<vmem>>, %arg9: memref<1x32x32xbf16, #tpu.memory_space<vmem>>, %arg10: memref<1x1x32xf32, #tpu.memory_space<vmem>>, %arg11: memref<1x1x32xf32, #tpu.memory_space<vmem>>, %arg12: memref<1x1x32xf32, #tpu.memory_space<vmem>>, %arg13: memref<1x32x128xbf16, #tpu.memory_space<vmem>>, %arg14: memref<1x1x128xf32, #tpu.memory_space<vmem>>, %arg15: memref<1x128x32xbf16, #tpu.memory_space<vmem>>, %arg16: memref<1x1x32xf32, #tpu.memory_space<vmem>>, %arg17: memref<1x32xf32, #tpu.memory_space<vmem>>, %arg18: memref<1x32xf32, #tpu.memory_space<vmem>>, %arg19: memref<2x32xf32, #tpu.memory_space<vmem>>, %arg20: memref<2x8x32xf32, #tpu.memory_space<vmem>>) attributes {dimension_semantics = [#tpu.dimension_semantics<arbitrary>], iteration_bounds = array<i64: 2>, scalar_prefetch = 0 : i64, scratch_operands = 1 : i64, tpu.core_type = #tpu.core_type<tc>, window_params = [{pipeline_mode = #tpu.pipeline_mode<synchronous>, transform_indices = @transform_0, window_bounds = array<i64: 2, 8, 192>}, {pipeline_mode = #tpu.pipeline_mode<synchronous>, transform_indices = @transform_1, window_bounds = array<i64: 192, 32>}, {pipeline_mode = #tpu.pipeline_mode<synchronous>, transform_indices = @transform_2, window_bounds = array<i64: 8, 32>}, {pipeline_mode = #tpu.pipeline_mode<synchronous>, transform_indices = @transform_3, window_bounds = array<i64: 1, 8>}, {transform_indices = @transform_4, window_bounds = array<i64: 1, 1, 32>}, {transform_indices = @transform_5, window_bounds = array<i64: 1, 1, 32>}, {transform_indices = @transform_6, window_bounds = array<i64: 1, 32, 96>}, {transform_indices = @transform_7, window_bounds = array<i64: 1, 1, 96>}, {transform_indices = @transform_8, window_bounds = array<i64: 1, 32, 32>}, {transform_indices = @transform_9, window_bounds = array<i64: 1, 1, 32>}, {transform_indices = @transform_10, window_bounds = array<i64: 1, 1, 32>}, {transform_indices = @transform_11, window_bounds = array<i64: 1, 1, 32>}, {transform_indices = @transform_12, window_bounds = array<i64: 1, 32, 128>}, {transform_indices = @transform_13, window_bounds = array<i64: 1, 1, 128>}, {transform_indices = @transform_14, window_bounds = array<i64: 1, 128, 32>}, {transform_indices = @transform_15, window_bounds = array<i64: 1, 1, 32>}, {pipeline_mode = #tpu.pipeline_mode<synchronous>, transform_indices = @transform_16, window_bounds = array<i64: 1, 32>}, {pipeline_mode = #tpu.pipeline_mode<synchronous>, transform_indices = @transform_17, window_bounds = array<i64: 1, 32>}, {pipeline_mode = #tpu.pipeline_mode<synchronous>, transform_indices = @transform_18, window_bounds = array<i64: 2, 32>}]} {
    %c0_i32 = arith.constant 0 : i32
    %0 = arith.cmpi eq, %arg0, %c0_i32 : i32
    %1 = arith.extui %0 : i1 to i32
    %c0_i32_0 = arith.constant 0 : i32
    %2 = arith.cmpi ne, %1, %c0_i32_0 : i32
    scf.if %2 {
      %c0_78 = arith.constant 0 : index
      %c0_79 = arith.constant 0 : index
      %c0_80 = arith.constant 0 : index
      %218 = vector.load %arg1[%c0_78, %c0_79, %c0_80] : memref<2x8x192xf32, #tpu.memory_space<vmem>>, vector<2x8x192xf32>
      %219 = vector.shape_cast %218 : vector<2x8x192xf32> to vector<16x192xf32>
      %220 = arith.truncf %219 : vector<16x192xf32> to vector<16x192xbf16>
      %c0_81 = arith.constant 0 : index
      %c0_82 = arith.constant 0 : index
      %221 = vector.load %arg2[%c0_81, %c0_82] : memref<192x32xbf16, #tpu.memory_space<vmem>>, vector<192x32xbf16>
      %cst_83 = arith.constant dense<0.000000e+00> : vector<16x32xf32>
      %222 = tpu.matmul %220, %221, %cst_83 {dimension_numbers = #tpu.dot_dimension_numbers<[1], [0], [0], [1], [0, 0, 1, 1], [], []>} : vector<16x192xbf16>, vector<192x32xbf16>, vector<16x32xf32> -> vector<16x32xf32>
      %223 = vector.shape_cast %222 : vector<16x32xf32> to vector<2x8x32xf32>
      %c0_84 = arith.constant 0 : index
      %c0_85 = arith.constant 0 : index
      %224 = vector.load %arg3[%c0_84, %c0_85] : memref<8x32xf32, #tpu.memory_space<vmem>>, vector<8x32xf32>
      %225 = vector.shape_cast %224 : vector<8x32xf32> to vector<1x8x32xf32>
      %226 = vector.broadcast %225 : vector<1x8x32xf32> to vector<2x8x32xf32>
      %227 = arith.addf %223, %226 : vector<2x8x32xf32>
      %c0_86 = arith.constant 0 : index
      %c0_87 = arith.constant 0 : index
      %c0_88 = arith.constant 0 : index
      %228 = vector.load %arg20[%c0_86, %c0_87, %c0_88] : memref<2x8x32xf32, #tpu.memory_space<vmem>>, vector<2x8x32xf32>
      tpu.vector_store %arg20[%c0_86, %c0_87, %c0_88], %227 {strides = array<i32>} : memref<2x8x32xf32, #tpu.memory_space<vmem>>, vector<2x8x32xf32>,
    } else {
    }
    %c0 = arith.constant 0 : index
    %c0_1 = arith.constant 0 : index
    %c0_2 = arith.constant 0 : index
    %3 = vector.load %arg20[%c0, %c0_1, %c0_2] : memref<2x8x32xf32, #tpu.memory_space<vmem>>, vector<2x8x32xf32>
    %c0_3 = arith.constant 0 : index
    %c0_4 = arith.constant 0 : index
    %c0_5 = arith.constant 0 : index
    %4 = vector.load %arg5[%c0_3, %c0_4, %c0_5] : memref<1x1x32xf32, #tpu.memory_space<vmem>>, vector<1x1x32xf32>
    %5 = vector.shape_cast %4 : vector<1x1x32xf32> to vector<1x32xf32>
    %c0_6 = arith.constant 0 : index
    %c0_7 = arith.constant 0 : index
    %c0_8 = arith.constant 0 : index
    %6 = vector.load %arg6[%c0_6, %c0_7, %c0_8] : memref<1x1x32xf32, #tpu.memory_space<vmem>>, vector<1x1x32xf32>
    %7 = vector.shape_cast %6 : vector<1x1x32xf32> to vector<1x32xf32>
    %cst = arith.constant dense<0.000000e+00> : vector<2x8xf32>
    %8 = vector.multi_reduction <add>, %3, %cst [2] : vector<2x8x32xf32> to vector<2x8xf32>
    %9 = vector.shape_cast %8 : vector<2x8xf32> to vector<2x8x1xf32>
    %cst_9 = arith.constant 3.200000e+01 : f32
    %10 = vector.broadcast %cst_9 : f32 to vector<2x8x1xf32>
    %11 = arith.divf %9, %10 : vector<2x8x1xf32>
    %12 = arith.mulf %3, %3 : vector<2x8x32xf32>
    %cst_10 = arith.constant dense<0.000000e+00> : vector<2x8xf32>
    %13 = vector.multi_reduction <add>, %12, %cst_10 [2] : vector<2x8x32xf32> to vector<2x8xf32>
    %14 = vector.shape_cast %13 : vector<2x8xf32> to vector<2x8x1xf32>
    %cst_11 = arith.constant 3.200000e+01 : f32
    %15 = vector.broadcast %cst_11 : f32 to vector<2x8x1xf32>
    %16 = arith.divf %14, %15 : vector<2x8x1xf32>
    %17 = arith.mulf %11, %11 : vector<2x8x1xf32>
    %18 = arith.subf %16, %17 : vector<2x8x1xf32>
    %19 = vector.broadcast %11 : vector<2x8x1xf32> to vector<2x8x32xf32>
    %20 = arith.subf %3, %19 : vector<2x8x32xf32>
    %cst_12 = arith.constant 9.99999997E-7 : f32
    %21 = vector.broadcast %cst_12 : f32 to vector<2x8x1xf32>
    %22 = arith.addf %18, %21 : vector<2x8x1xf32>
    %23 = math.rsqrt %22 : vector<2x8x1xf32>
    %24 = vector.broadcast %23 : vector<2x8x1xf32> to vector<2x8x32xf32>
    %25 = arith.mulf %20, %24 : vector<2x8x32xf32>
    %26 = vector.shape_cast %5 : vector<1x32xf32> to vector<1x1x32xf32>
    %27 = vector.broadcast %26 : vector<1x1x32xf32> to vector<2x8x32xf32>
    %28 = arith.mulf %25, %27 : vector<2x8x32xf32>
    %29 = vector.shape_cast %7 : vector<1x32xf32> to vector<1x1x32xf32>
    %30 = vector.broadcast %29 : vector<1x1x32xf32> to vector<2x8x32xf32>
    %31 = arith.addf %28, %30 : vector<2x8x32xf32>
    %32 = vector.shape_cast %31 : vector<2x8x32xf32> to vector<16x32xf32>
    %33 = arith.truncf %32 : vector<16x32xf32> to vector<16x32xbf16>
    %c0_13 = arith.constant 0 : index
    %c0_14 = arith.constant 0 : index
    %c0_15 = arith.constant 0 : index
    %34 = vector.load %arg7[%c0_13, %c0_14, %c0_15] : memref<1x32x96xbf16, #tpu.memory_space<vmem>>, vector<1x32x96xbf16>
    %35 = vector.shape_cast %34 : vector<1x32x96xbf16> to vector<32x96xbf16>
    %cst_16 = arith.constant dense<0.000000e+00> : vector<16x96xf32>
    %36 = tpu.matmul %33, %35, %cst_16 {dimension_numbers = #tpu.dot_dimension_numbers<[1], [0], [0], [1], [0, 0, 1, 1], [], []>} : vector<16x32xbf16>, vector<32x96xbf16>, vector<16x96xf32> -> vector<16x96xf32>
    %c0_17 = arith.constant 0 : index
    %c0_18 = arith.constant 0 : index
    %c0_19 = arith.constant 0 : index
    %37 = vector.load %arg8[%c0_17, %c0_18, %c0_19] : memref<1x1x96xf32, #tpu.memory_space<vmem>>, vector<1x1x96xf32>
    %38 = vector.shape_cast %37 : vector<1x1x96xf32> to vector<1x96xf32>
    %39 = vector.broadcast %38 : vector<1x96xf32> to vector<16x96xf32>
    %40 = arith.addf %36, %39 : vector<16x96xf32>
    %c0_20 = arith.constant 0 : index
    %c0_21 = arith.constant 0 : index
    %41 = vector.load %arg4[%c0_20, %c0_21] : memref<1x8xf32, #tpu.memory_space<vmem>>, vector<1x8xf32>
    %42 = vector.extract_strided_slice %40 {offsets = [0, 0], sizes = [16, 8], strides = [1, 1]} : vector<16x96xf32> to vector<16x8xf32>
    %43 = vector.shape_cast %42 : vector<16x8xf32> to vector<2x8x8xf32>
    %44 = vector.extract_strided_slice %40 {offsets = [0, 32], sizes = [16, 8], strides = [1, 1]} : vector<16x96xf32> to vector<16x8xf32>
    %45 = vector.shape_cast %44 : vector<16x8xf32> to vector<2x8x8xf32>
    %46 = vector.extract_strided_slice %40 {offsets = [0, 64], sizes = [16, 8], strides = [1, 1]} : vector<16x96xf32> to vector<16x8xf32>
    %47 = vector.shape_cast %46 : vector<16x8xf32> to vector<2x8x8xf32>
    %48 = arith.truncf %43 : vector<2x8x8xf32> to vector<2x8x8xbf16>
    %49 = arith.truncf %45 : vector<2x8x8xf32> to vector<2x8x8xbf16>
    "tpu.trace_start"() <{level = 10 : i32, message = "bqf,bkf->bqk"}> : () -> ()
    %cst_22 = arith.constant dense<0.000000e+00> : vector<2x8x8xf32>
    %50 = tpu.matmul %48, %49, %cst_22 {dimension_numbers = #tpu.dot_dimension_numbers<[2], [2], [1], [1], [0, 0, 0, 1, 1, 1], [0], [0]>} : vector<2x8x8xbf16>, vector<2x8x8xbf16>, vector<2x8x8xf32> -> vector<2x8x8xf32>
    "tpu.trace_stop"() : () -> ()
    %51 = vector.shape_cast %41 : vector<1x8xf32> to vector<1x1x8xf32>
    %52 = vector.broadcast %51 : vector<1x1x8xf32> to vector<2x8x8xf32>
    %53 = arith.addf %50, %52 : vector<2x8x8xf32>
    %cst_23 = arith.constant dense<0xFF800000> : vector<2x8xf32>
    %54 = vector.multi_reduction <maximumf>, %53, %cst_23 [2] : vector<2x8x8xf32> to vector<2x8xf32>
    %55 = vector.shape_cast %54 : vector<2x8xf32> to vector<2x8x1xf32>
    %56 = vector.broadcast %55 : vector<2x8x1xf32> to vector<2x8x8xf32>
    %57 = arith.subf %53, %56 : vector<2x8x8xf32>
    %58 = math.exp %57 : vector<2x8x8xf32>
    %cst_24 = arith.constant dense<0.000000e+00> : vector<2x8xf32>
    %59 = vector.multi_reduction <add>, %58, %cst_24 [2] : vector<2x8x8xf32> to vector<2x8xf32>
    %60 = vector.shape_cast %59 : vector<2x8xf32> to vector<2x8x1xf32>
    %61 = tpu.reciprocal %60 {approx = true} : vector<2x8x1xf32> -> vector<2x8x1xf32>
    %62 = vector.broadcast %61 : vector<2x8x1xf32> to vector<2x8x8xf32>
    %63 = arith.mulf %58, %62 : vector<2x8x8xf32>
    %64 = arith.truncf %63 : vector<2x8x8xf32> to vector<2x8x8xbf16>
    %65 = arith.truncf %47 : vector<2x8x8xf32> to vector<2x8x8xbf16>
    "tpu.trace_start"() <{level = 10 : i32, message = "bqk,bkf->bqf"}> : () -> ()
    %cst_25 = arith.constant dense<0.000000e+00> : vector<2x8x8xf32>
    %66 = tpu.matmul %64, %65, %cst_25 {dimension_numbers = #tpu.dot_dimension_numbers<[2], [1], [1], [2], [0, 0, 0, 1, 1, 2], [0], [0]>} : vector<2x8x8xbf16>, vector<2x8x8xbf16>, vector<2x8x8xf32> -> vector<2x8x8xf32>
    "tpu.trace_stop"() : () -> ()
    %67 = vector.extract_strided_slice %40 {offsets = [0, 8], sizes = [16, 8], strides = [1, 1]} : vector<16x96xf32> to vector<16x8xf32>
    %68 = vector.shape_cast %67 : vector<16x8xf32> to vector<2x8x8xf32>
    %69 = vector.extract_strided_slice %40 {offsets = [0, 40], sizes = [16, 8], strides = [1, 1]} : vector<16x96xf32> to vector<16x8xf32>
    %70 = vector.shape_cast %69 : vector<16x8xf32> to vector<2x8x8xf32>
    %71 = vector.extract_strided_slice %40 {offsets = [0, 72], sizes = [16, 8], strides = [1, 1]} : vector<16x96xf32> to vector<16x8xf32>
    %72 = vector.shape_cast %71 : vector<16x8xf32> to vector<2x8x8xf32>
    %73 = arith.truncf %68 : vector<2x8x8xf32> to vector<2x8x8xbf16>
    %74 = arith.truncf %70 : vector<2x8x8xf32> to vector<2x8x8xbf16>
    "tpu.trace_start"() <{level = 10 : i32, message = "bqf,bkf->bqk"}> : () -> ()
    %cst_26 = arith.constant dense<0.000000e+00> : vector<2x8x8xf32>
    %75 = tpu.matmul %73, %74, %cst_26 {dimension_numbers = #tpu.dot_dimension_numbers<[2], [2], [1], [1], [0, 0, 0, 1, 1, 1], [0], [0]>} : vector<2x8x8xbf16>, vector<2x8x8xbf16>, vector<2x8x8xf32> -> vector<2x8x8xf32>
    "tpu.trace_stop"() : () -> ()
    %76 = vector.shape_cast %41 : vector<1x8xf32> to vector<1x1x8xf32>
    %77 = vector.broadcast %76 : vector<1x1x8xf32> to vector<2x8x8xf32>
    %78 = arith.addf %75, %77 : vector<2x8x8xf32>
    %cst_27 = arith.constant dense<0xFF800000> : vector<2x8xf32>
    %79 = vector.multi_reduction <maximumf>, %78, %cst_27 [2] : vector<2x8x8xf32> to vector<2x8xf32>
    %80 = vector.shape_cast %79 : vector<2x8xf32> to vector<2x8x1xf32>
    %81 = vector.broadcast %80 : vector<2x8x1xf32> to vector<2x8x8xf32>
    %82 = arith.subf %78, %81 : vector<2x8x8xf32>
    %83 = math.exp %82 : vector<2x8x8xf32>
    %cst_28 = arith.constant dense<0.000000e+00> : vector<2x8xf32>
    %84 = vector.multi_reduction <add>, %83, %cst_28 [2] : vector<2x8x8xf32> to vector<2x8xf32>
    %85 = vector.shape_cast %84 : vector<2x8xf32> to vector<2x8x1xf32>
    %86 = tpu.reciprocal %85 {approx = true} : vector<2x8x1xf32> -> vector<2x8x1xf32>
    %87 = vector.broadcast %86 : vector<2x8x1xf32> to vector<2x8x8xf32>
    %88 = arith.mulf %83, %87 : vector<2x8x8xf32>
    %89 = arith.truncf %88 : vector<2x8x8xf32> to vector<2x8x8xbf16>
    %90 = arith.truncf %72 : vector<2x8x8xf32> to vector<2x8x8xbf16>
    "tpu.trace_start"() <{level = 10 : i32, message = "bqk,bkf->bqf"}> : () -> ()
    %cst_29 = arith.constant dense<0.000000e+00> : vector<2x8x8xf32>
    %91 = tpu.matmul %89, %90, %cst_29 {dimension_numbers = #tpu.dot_dimension_numbers<[2], [1], [1], [2], [0, 0, 0, 1, 1, 2], [0], [0]>} : vector<2x8x8xbf16>, vector<2x8x8xbf16>, vector<2x8x8xf32> -> vector<2x8x8xf32>
    "tpu.trace_stop"() : () -> ()
    %92 = vector.extract_strided_slice %40 {offsets = [0, 16], sizes = [16, 8], strides = [1, 1]} : vector<16x96xf32> to vector<16x8xf32>
    %93 = vector.shape_cast %92 : vector<16x8xf32> to vector<2x8x8xf32>
    %94 = vector.extract_strided_slice %40 {offsets = [0, 48], sizes = [16, 8], strides = [1, 1]} : vector<16x96xf32> to vector<16x8xf32>
    %95 = vector.shape_cast %94 : vector<16x8xf32> to vector<2x8x8xf32>
    %96 = vector.extract_strided_slice %40 {offsets = [0, 80], sizes = [16, 8], strides = [1, 1]} : vector<16x96xf32> to vector<16x8xf32>
    %97 = vector.shape_cast %96 : vector<16x8xf32> to vector<2x8x8xf32>
    %98 = arith.truncf %93 : vector<2x8x8xf32> to vector<2x8x8xbf16>
    %99 = arith.truncf %95 : vector<2x8x8xf32> to vector<2x8x8xbf16>
    "tpu.trace_start"() <{level = 10 : i32, message = "bqf,bkf->bqk"}> : () -> ()
    %cst_30 = arith.constant dense<0.000000e+00> : vector<2x8x8xf32>
    %100 = tpu.matmul %98, %99, %cst_30 {dimension_numbers = #tpu.dot_dimension_numbers<[2], [2], [1], [1], [0, 0, 0, 1, 1, 1], [0], [0]>} : vector<2x8x8xbf16>, vector<2x8x8xbf16>, vector<2x8x8xf32> -> vector<2x8x8xf32>
    "tpu.trace_stop"() : () -> ()
    %101 = vector.shape_cast %41 : vector<1x8xf32> to vector<1x1x8xf32>
    %102 = vector.broadcast %101 : vector<1x1x8xf32> to vector<2x8x8xf32>
    %103 = arith.addf %100, %102 : vector<2x8x8xf32>
    %cst_31 = arith.constant dense<0xFF800000> : vector<2x8xf32>
    %104 = vector.multi_reduction <maximumf>, %103, %cst_31 [2] : vector<2x8x8xf32> to vector<2x8xf32>
    %105 = vector.shape_cast %104 : vector<2x8xf32> to vector<2x8x1xf32>
    %106 = vector.broadcast %105 : vector<2x8x1xf32> to vector<2x8x8xf32>
    %107 = arith.subf %103, %106 : vector<2x8x8xf32>
    %108 = math.exp %107 : vector<2x8x8xf32>
    %cst_32 = arith.constant dense<0.000000e+00> : vector<2x8xf32>
    %109 = vector.multi_reduction <add>, %108, %cst_32 [2] : vector<2x8x8xf32> to vector<2x8xf32>
    %110 = vector.shape_cast %109 : vector<2x8xf32> to vector<2x8x1xf32>
    %111 = tpu.reciprocal %110 {approx = true} : vector<2x8x1xf32> -> vector<2x8x1xf32>
    %112 = vector.broadcast %111 : vector<2x8x1xf32> to vector<2x8x8xf32>
    %113 = arith.mulf %108, %112 : vector<2x8x8xf32>
    %114 = arith.truncf %113 : vector<2x8x8xf32> to vector<2x8x8xbf16>
    %115 = arith.truncf %97 : vector<2x8x8xf32> to vector<2x8x8xbf16>
    "tpu.trace_start"() <{level = 10 : i32, message = "bqk,bkf->bqf"}> : () -> ()
    %cst_33 = arith.constant dense<0.000000e+00> : vector<2x8x8xf32>
    %116 = tpu.matmul %114, %115, %cst_33 {dimension_numbers = #tpu.dot_dimension_numbers<[2], [1], [1], [2], [0, 0, 0, 1, 1, 2], [0], [0]>} : vector<2x8x8xbf16>, vector<2x8x8xbf16>, vector<2x8x8xf32> -> vector<2x8x8xf32>
    "tpu.trace_stop"() : () -> ()
    %117 = vector.extract_strided_slice %40 {offsets = [0, 24], sizes = [16, 8], strides = [1, 1]} : vector<16x96xf32> to vector<16x8xf32>
    %118 = vector.shape_cast %117 : vector<16x8xf32> to vector<2x8x8xf32>
    %119 = vector.extract_strided_slice %40 {offsets = [0, 56], sizes = [16, 8], strides = [1, 1]} : vector<16x96xf32> to vector<16x8xf32>
    %120 = vector.shape_cast %119 : vector<16x8xf32> to vector<2x8x8xf32>
    %121 = vector.extract_strided_slice %40 {offsets = [0, 88], sizes = [16, 8], strides = [1, 1]} : vector<16x96xf32> to vector<16x8xf32>
    %122 = vector.shape_cast %121 : vector<16x8xf32> to vector<2x8x8xf32>
    %123 = arith.truncf %118 : vector<2x8x8xf32> to vector<2x8x8xbf16>
    %124 = arith.truncf %120 : vector<2x8x8xf32> to vector<2x8x8xbf16>
    "tpu.trace_start"() <{level = 10 : i32, message = "bqf,bkf->bqk"}> : () -> ()
    %cst_34 = arith.constant dense<0.000000e+00> : vector<2x8x8xf32>
    %125 = tpu.matmul %123, %124, %cst_34 {dimension_numbers = #tpu.dot_dimension_numbers<[2], [2], [1], [1], [0, 0, 0, 1, 1, 1], [0], [0]>} : vector<2x8x8xbf16>, vector<2x8x8xbf16>, vector<2x8x8xf32> -> vector<2x8x8xf32>
    "tpu.trace_stop"() : () -> ()
    %126 = vector.shape_cast %41 : vector<1x8xf32> to vector<1x1x8xf32>
    %127 = vector.broadcast %126 : vector<1x1x8xf32> to vector<2x8x8xf32>
    %128 = arith.addf %125, %127 : vector<2x8x8xf32>
    %cst_35 = arith.constant dense<0xFF800000> : vector<2x8xf32>
    %129 = vector.multi_reduction <maximumf>, %128, %cst_35 [2] : vector<2x8x8xf32> to vector<2x8xf32>
    %130 = vector.shape_cast %129 : vector<2x8xf32> to vector<2x8x1xf32>
    %131 = vector.broadcast %130 : vector<2x8x1xf32> to vector<2x8x8xf32>
    %132 = arith.subf %128, %131 : vector<2x8x8xf32>
    %133 = math.exp %132 : vector<2x8x8xf32>
    %cst_36 = arith.constant dense<0.000000e+00> : vector<2x8xf32>
    %134 = vector.multi_reduction <add>, %133, %cst_36 [2] : vector<2x8x8xf32> to vector<2x8xf32>
    %135 = vector.shape_cast %134 : vector<2x8xf32> to vector<2x8x1xf32>
    %136 = tpu.reciprocal %135 {approx = true} : vector<2x8x1xf32> -> vector<2x8x1xf32>
    %137 = vector.broadcast %136 : vector<2x8x1xf32> to vector<2x8x8xf32>
    %138 = arith.mulf %133, %137 : vector<2x8x8xf32>
    %139 = arith.truncf %138 : vector<2x8x8xf32> to vector<2x8x8xbf16>
    %140 = arith.truncf %122 : vector<2x8x8xf32> to vector<2x8x8xbf16>
    "tpu.trace_start"() <{level = 10 : i32, message = "bqk,bkf->bqf"}> : () -> ()
    %cst_37 = arith.constant dense<0.000000e+00> : vector<2x8x8xf32>
    %141 = tpu.matmul %139, %140, %cst_37 {dimension_numbers = #tpu.dot_dimension_numbers<[2], [1], [1], [2], [0, 0, 0, 1, 1, 2], [0], [0]>} : vector<2x8x8xbf16>, vector<2x8x8xbf16>, vector<2x8x8xf32> -> vector<2x8x8xf32>
    "tpu.trace_stop"() : () -> ()
    %142 = tpu.concatenate %66, %91, %116, %141 in 2 : vector<2x8x8xf32>, vector<2x8x8xf32>, vector<2x8x8xf32>, vector<2x8x8xf32> -> vector<2x8x32xf32>
    %143 = vector.shape_cast %142 : vector<2x8x32xf32> to vector<16x32xf32>
    %144 = arith.truncf %143 : vector<16x32xf32> to vector<16x32xbf16>
    %c0_38 = arith.constant 0 : index
    %c0_39 = arith.constant 0 : index
    %c0_40 = arith.constant 0 : index
    %145 = vector.load %arg9[%c0_38, %c0_39, %c0_40] : memref<1x32x32xbf16, #tpu.memory_space<vmem>>, vector<1x32x32xbf16>
    %146 = vector.shape_cast %145 : vector<1x32x32xbf16> to vector<32x32xbf16>
    %cst_41 = arith.constant dense<0.000000e+00> : vector<16x32xf32>
    %147 = tpu.matmul %144, %146, %cst_41 {dimension_numbers = #tpu.dot_dimension_numbers<[1], [0], [0], [1], [0, 0, 1, 1], [], []>} : vector<16x32xbf16>, vector<32x32xbf16>, vector<16x32xf32> -> vector<16x32xf32>
    %c0_42 = arith.constant 0 : index
    %c0_43 = arith.constant 0 : index
    %c0_44 = arith.constant 0 : index
    %148 = vector.load %arg10[%c0_42, %c0_43, %c0_44] : memref<1x1x32xf32, #tpu.memory_space<vmem>>, vector<1x1x32xf32>
    %149 = vector.shape_cast %148 : vector<1x1x32xf32> to vector<1x32xf32>
    %150 = vector.broadcast %149 : vector<1x32xf32> to vector<16x32xf32>
    %151 = arith.addf %147, %150 : vector<16x32xf32>
    %152 = vector.shape_cast %151 : vector<16x32xf32> to vector<2x8x32xf32>
    %153 = arith.addf %3, %152 : vector<2x8x32xf32>
    %c0_45 = arith.constant 0 : index
    %c0_46 = arith.constant 0 : index
    %c0_47 = arith.constant 0 : index
    %154 = vector.load %arg11[%c0_45, %c0_46, %c0_47] : memref<1x1x32xf32, #tpu.memory_space<vmem>>, vector<1x1x32xf32>
    %155 = vector.shape_cast %154 : vector<1x1x32xf32> to vector<1x32xf32>
    %c0_48 = arith.constant 0 : index
    %c0_49 = arith.constant 0 : index
    %c0_50 = arith.constant 0 : index
    %156 = vector.load %arg12[%c0_48, %c0_49, %c0_50] : memref<1x1x32xf32, #tpu.memory_space<vmem>>, vector<1x1x32xf32>
    %157 = vector.shape_cast %156 : vector<1x1x32xf32> to vector<1x32xf32>
    %cst_51 = arith.constant dense<0.000000e+00> : vector<2x8xf32>
    %158 = vector.multi_reduction <add>, %153, %cst_51 [2] : vector<2x8x32xf32> to vector<2x8xf32>
    %159 = vector.shape_cast %158 : vector<2x8xf32> to vector<2x8x1xf32>
    %cst_52 = arith.constant 3.200000e+01 : f32
    %160 = vector.broadcast %cst_52 : f32 to vector<2x8x1xf32>
    %161 = arith.divf %159, %160 : vector<2x8x1xf32>
    %162 = arith.mulf %153, %153 : vector<2x8x32xf32>
    %cst_53 = arith.constant dense<0.000000e+00> : vector<2x8xf32>
    %163 = vector.multi_reduction <add>, %162, %cst_53 [2] : vector<2x8x32xf32> to vector<2x8xf32>
    %164 = vector.shape_cast %163 : vector<2x8xf32> to vector<2x8x1xf32>
    %cst_54 = arith.constant 3.200000e+01 : f32
    %165 = vector.broadcast %cst_54 : f32 to vector<2x8x1xf32>
    %166 = arith.divf %164, %165 : vector<2x8x1xf32>
    %167 = arith.mulf %161, %161 : vector<2x8x1xf32>
    %168 = arith.subf %166, %167 : vector<2x8x1xf32>
    %169 = vector.broadcast %161 : vector<2x8x1xf32> to vector<2x8x32xf32>
    %170 = arith.subf %153, %169 : vector<2x8x32xf32>
    %cst_55 = arith.constant 9.99999997E-7 : f32
    %171 = vector.broadcast %cst_55 : f32 to vector<2x8x1xf32>
    %172 = arith.addf %168, %171 : vector<2x8x1xf32>
    %173 = math.rsqrt %172 : vector<2x8x1xf32>
    %174 = vector.broadcast %173 : vector<2x8x1xf32> to vector<2x8x32xf32>
    %175 = arith.mulf %170, %174 : vector<2x8x32xf32>
    %176 = vector.shape_cast %155 : vector<1x32xf32> to vector<1x1x32xf32>
    %177 = vector.broadcast %176 : vector<1x1x32xf32> to vector<2x8x32xf32>
    %178 = arith.mulf %175, %177 : vector<2x8x32xf32>
    %179 = vector.shape_cast %157 : vector<1x32xf32> to vector<1x1x32xf32>
    %180 = vector.broadcast %179 : vector<1x1x32xf32> to vector<2x8x32xf32>
    %181 = arith.addf %178, %180 : vector<2x8x32xf32>
    %182 = vector.shape_cast %181 : vector<2x8x32xf32> to vector<16x32xf32>
    %183 = arith.truncf %182 : vector<16x32xf32> to vector<16x32xbf16>
    %c0_56 = arith.constant 0 : index
    %c0_57 = arith.constant 0 : index
    %c0_58 = arith.constant 0 : index
    %184 = vector.load %arg13[%c0_56, %c0_57, %c0_58] : memref<1x32x128xbf16, #tpu.memory_space<vmem>>, vector<1x32x128xbf16>
    %185 = vector.shape_cast %184 : vector<1x32x128xbf16> to vector<32x128xbf16>
    %cst_59 = arith.constant dense<0.000000e+00> : vector<16x128xf32>
    %186 = tpu.matmul %183, %185, %cst_59 {dimension_numbers = #tpu.dot_dimension_numbers<[1], [0], [0], [1], [0, 0, 1, 1], [], []>} : vector<16x32xbf16>, vector<32x128xbf16>, vector<16x128xf32> -> vector<16x128xf32>
    %c0_60 = arith.constant 0 : index
    %c0_61 = arith.constant 0 : index
    %c0_62 = arith.constant 0 : index
    %187 = vector.load %arg14[%c0_60, %c0_61, %c0_62] : memref<1x1x128xf32, #tpu.memory_space<vmem>>, vector<1x1x128xf32>
    %188 = vector.shape_cast %187 : vector<1x1x128xf32> to vector<1x128xf32>
    %189 = vector.broadcast %188 : vector<1x128xf32> to vector<16x128xf32>
    %190 = arith.addf %186, %189 : vector<16x128xf32>
    %cst_63 = arith.constant 5.000000e-01 : f32
    %191 = vector.broadcast %cst_63 : f32 to vector<16x128xf32>
    %192 = arith.mulf %191, %190 : vector<16x128xf32>
    %193 = arith.mulf %190, %190 : vector<16x128xf32>
    %194 = arith.mulf %193, %190 : vector<16x128xf32>
    %cst_64 = arith.constant 4.471500e-02 : f32
    %195 = vector.broadcast %cst_64 : f32 to vector<16x128xf32>
    %196 = arith.mulf %195, %194 : vector<16x128xf32>
    %197 = arith.addf %190, %196 : vector<16x128xf32>
    %cst_65 = arith.constant 0.797884583 : f32
    %198 = vector.broadcast %cst_65 : f32 to vector<16x128xf32>
    %199 = arith.mulf %198, %197 : vector<16x128xf32>
    %200 = math.tanh %199 : vector<16x128xf32>
    %cst_66 = arith.constant 1.000000e+00 : f32
    %201 = vector.broadcast %cst_66 : f32 to vector<16x128xf32>
    %202 = arith.addf %201, %200 : vector<16x128xf32>
    %203 = arith.mulf %192, %202 : vector<16x128xf32>
    %204 = arith.truncf %203 : vector<16x128xf32> to vector<16x128xbf16>
    %c0_67 = arith.constant 0 : index
    %c0_68 = arith.constant 0 : index
    %c0_69 = arith.constant 0 : index
    %205 = vector.load %arg15[%c0_67, %c0_68, %c0_69] : memref<1x128x32xbf16, #tpu.memory_space<vmem>>, vector<1x128x32xbf16>
    %206 = vector.shape_cast %205 : vector<1x128x32xbf16> to vector<128x32xbf16>
    %cst_70 = arith.constant dense<0.000000e+00> : vector<16x32xf32>
    %207 = tpu.matmul %204, %206, %cst_70 {dimension_numbers = #tpu.dot_dimension_numbers<[1], [0], [0], [1], [0, 0, 1, 1], [], []>} : vector<16x128xbf16>, vector<128x32xbf16>, vector<16x32xf32> -> vector<16x32xf32>
    %c0_71 = arith.constant 0 : index
    %c0_72 = arith.constant 0 : index
    %c0_73 = arith.constant 0 : index
    %208 = vector.load %arg16[%c0_71, %c0_72, %c0_73] : memref<1x1x32xf32, #tpu.memory_space<vmem>>, vector<1x1x32xf32>
    %209 = vector.shape_cast %208 : vector<1x1x32xf32> to vector<1x32xf32>
    %210 = vector.broadcast %209 : vector<1x32xf32> to vector<16x32xf32>
    %211 = arith.addf %207, %210 : vector<16x32xf32>
    %212 = vector.shape_cast %211 : vector<16x32xf32> to vector<2x8x32xf32>
    %213 = arith.addf %153, %212 : vector<2x8x32xf32>
    %c0_74 = arith.constant 0 : index
    %c0_75 = arith.constant 0 : index
    %c0_76 = arith.constant 0 : index
    %214 = vector.load %arg20[%c0_74, %c0_75, %c0_76] : memref<2x8x32xf32, #tpu.memory_space<vmem>>, vector<2x8x32xf32>
    tpu.vector_store %arg20[%c0_74, %c0_75, %c0_76], %213 {strides = array<i32>} : memref<2x8x32xf32, #tpu.memory_space<vmem>>, vector<2x8x32xf32>,
    %c1_i32 = arith.constant 1 : i32
    %215 = arith.cmpi eq, %arg0, %c1_i32 : i32
    %216 = arith.extui %215 : i1 to i32
    %c0_i32_77 = arith.constant 0 : i32
    %217 = arith.cmpi ne, %216, %c0_i32_77 : i32
    scf.if %217 {
      %218 = vector.extract_strided_slice %213 {offsets = [0, 0, 0], sizes = [2, 1, 32], strides = [1, 1, 1]} : vector<2x8x32xf32> to vector<2x1x32xf32>
      %219 = vector.shape_cast %218 : vector<2x1x32xf32> to vector<2x32xf32>
      %c0_78 = arith.constant 0 : index
      %c0_79 = arith.constant 0 : index
      %220 = vector.load %arg17[%c0_78, %c0_79] : memref<1x32xf32, #tpu.memory_space<vmem>>, vector<1x32xf32>
      %c0_80 = arith.constant 0 : index
      %c0_81 = arith.constant 0 : index
      %221 = vector.load %arg18[%c0_80, %c0_81] : memref<1x32xf32, #tpu.memory_space<vmem>>, vector<1x32xf32>
      %cst_82 = arith.constant dense<0.000000e+00> : vector<2xf32>
      %222 = vector.multi_reduction <add>, %219, %cst_82 [1] : vector<2x32xf32> to vector<2xf32>
      %223 = vector.shape_cast %222 : vector<2xf32> to vector<2x1xf32>
      %cst_83 = arith.constant 3.200000e+01 : f32
      %224 = vector.broadcast %cst_83 : f32 to vector<2x1xf32>
      %225 = arith.divf %223, %224 : vector<2x1xf32>
      %226 = arith.mulf %219, %219 : vector<2x32xf32>
      %cst_84 = arith.constant dense<0.000000e+00> : vector<2xf32>
      %227 = vector.multi_reduction <add>, %226, %cst_84 [1] : vector<2x32xf32> to vector<2xf32>
      %228 = vector.shape_cast %227 : vector<2xf32> to vector<2x1xf32>
      %cst_85 = arith.constant 3.200000e+01 : f32
      %229 = vector.broadcast %cst_85 : f32 to vector<2x1xf32>
      %230 = arith.divf %228, %229 : vector<2x1xf32>
      %231 = arith.mulf %225, %225 : vector<2x1xf32>
      %232 = arith.subf %230, %231 : vector<2x1xf32>
      %233 = vector.broadcast %225 : vector<2x1xf32> to vector<2x32xf32>
      %234 = arith.subf %219, %233 : vector<2x32xf32>
      %cst_86 = arith.constant 9.99999997E-7 : f32
      %235 = vector.broadcast %cst_86 : f32 to vector<2x1xf32>
      %236 = arith.addf %232, %235 : vector<2x1xf32>
      %237 = math.rsqrt %236 : vector<2x1xf32>
      %238 = vector.broadcast %237 : vector<2x1xf32> to vector<2x32xf32>
      %239 = arith.mulf %234, %238 : vector<2x32xf32>
      %240 = vector.broadcast %220 : vector<1x32xf32> to vector<2x32xf32>
      %241 = arith.mulf %239, %240 : vector<2x32xf32>
      %242 = vector.broadcast %221 : vector<1x32xf32> to vector<2x32xf32>
      %243 = arith.addf %241, %242 : vector<2x32xf32>
      %c0_87 = arith.constant 0 : index
      %c0_88 = arith.constant 0 : index
      %244 = vector.load %arg19[%c0_87, %c0_88] : memref<2x32xf32, #tpu.memory_space<vmem>>, vector<2x32xf32>
      tpu.vector_store %arg19[%c0_87, %c0_88], %243 {strides = array<i32>} : memref<2x32xf32, #tpu.memory_space<vmem>>, vector<2x32xf32>,
    } else {
    }
    return
  }
  func.func @transform_0(%arg0: i32) -> (i32, i32, i32) {
    %c0_i32 = arith.constant 0 : i32
    %c0_i32_0 = arith.constant 0 : i32
    %c0_i32_1 = arith.constant 0 : i32
    %c0_i32_2 = arith.constant 0 : i32
    return %c0_i32, %c0_i32_0, %c0_i32_1 : i32, i32, i32
  }
  func.func @transform_1(%arg0: i32) -> (i32, i32) {
    %c0_i32 = arith.constant 0 : i32
    %c0_i32_0 = arith.constant 0 : i32
    %c0_i32_1 = arith.constant 0 : i32
    return %c0_i32, %c0_i32_0 : i32, i32
  }
  func.func @transform_2(%arg0: i32) -> (i32, i32) {
    %c0_i32 = arith.constant 0 : i32
    %c0_i32_0 = arith.constant 0 : i32
    %c0_i32_1 = arith.constant 0 : i32
    return %c0_i32, %c0_i32_0 : i32, i32
  }
  func.func @transform_3(%arg0: i32) -> (i32, i32) {
    %c0_i32 = arith.constant 0 : i32
    %c0_i32_0 = arith.constant 0 : i32
    %c0_i32_1 = arith.constant 0 : i32
    return %c0_i32, %c0_i32_0 : i32, i32
  }
  func.func @transform_4(%arg0: i32) -> (i32, i32, i32) {
    %c0_i32 = arith.constant 0 : i32
    %c0_i32_0 = arith.constant 0 : i32
    %c0_i32_1 = arith.constant 0 : i32
    return %arg0, %c0_i32, %c0_i32_0 : i32, i32, i32
  }
  func.func @transform_5(%arg0: i32) -> (i32, i32, i32) {
    %c0_i32 = arith.constant 0 : i32
    %c0_i32_0 = arith.constant 0 : i32
    %c0_i32_1 = arith.constant 0 : i32
    return %arg0, %c0_i32, %c0_i32_0 : i32, i32, i32
  }
  func.func @transform_6(%arg0: i32) -> (i32, i32, i32) {
    %c0_i32 = arith.constant 0 : i32
    %c0_i32_0 = arith.constant 0 : i32
    %c0_i32_1 = arith.constant 0 : i32
    return %arg0, %c0_i32, %c0_i32_0 : i32, i32, i32
  }
  func.func @transform_7(%arg0: i32) -> (i32, i32, i32) {
    %c0_i32 = arith.constant 0 : i32
    %c0_i32_0 = arith.constant 0 : i32
    %c0_i32_1 = arith.constant 0 : i32
    return %arg0, %c0_i32, %c0_i32_0 : i32, i32, i32
  }
  func.func @transform_8(%arg0: i32) -> (i32, i32, i32) {
    %c0_i32 = arith.constant 0 : i32
    %c0_i32_0 = arith.constant 0 : i32
    %c0_i32_1 = arith.constant 0 : i32
    return %arg0, %c0_i32, %c0_i32_0 : i32, i32, i32
  }
  func.func @transform_9(%arg0: i32) -> (i32, i32, i32) {
    %c0_i32 = arith.constant 0 : i32
    %c0_i32_0 = arith.constant 0 : i32
    %c0_i32_1 = arith.constant 0 : i32
    return %arg0, %c0_i32, %c0_i32_0 : i32, i32, i32
  }
  func.func @transform_10(%arg0: i32) -> (i32, i32, i32) {
    %c0_i32 = arith.constant 0 : i32
    %c0_i32_0 = arith.constant 0 : i32
    %c0_i32_1 = arith.constant 0 : i32
    return %arg0, %c0_i32, %c0_i32_0 : i32, i32, i32
  }
  func.func @transform_11(%arg0: i32) -> (i32, i32, i32) {
    %c0_i32 = arith.constant 0 : i32
    %c0_i32_0 = arith.constant 0 : i32
    %c0_i32_1 = arith.constant 0 : i32
    return %arg0, %c0_i32, %c0_i32_0 : i32, i32, i32
  }
  func.func @transform_12(%arg0: i32) -> (i32, i32, i32) {
    %c0_i32 = arith.constant 0 : i32
    %c0_i32_0 = arith.constant 0 : i32
    %c0_i32_1 = arith.constant 0 : i32
    return %arg0, %c0_i32, %c0_i32_0 : i32, i32, i32
  }
  func.func @transform_13(%arg0: i32) -> (i32, i32, i32) {
    %c0_i32 = arith.constant 0 : i32
    %c0_i32_0 = arith.constant 0 : i32
    %c0_i32_1 = arith.constant 0 : i32
    return %arg0, %c0_i32, %c0_i32_0 : i32, i32, i32
  }
  func.func @transform_14(%arg0: i32) -> (i32, i32, i32) {
    %c0_i32 = arith.constant 0 : i32
    %c0_i32_0 = arith.constant 0 : i32
    %c0_i32_1 = arith.constant 0 : i32
    return %arg0, %c0_i32, %c0_i32_0 : i32, i32, i32
  }
  func.func @transform_15(%arg0: i32) -> (i32, i32, i32) {
    %c0_i32 = arith.constant 0 : i32
    %c0_i32_0 = arith.constant 0 : i32
    %c0_i32_1 = arith.constant 0 : i32
    return %arg0, %c0_i32, %c0_i32_0 : i32, i32, i32
  }
  func.func @transform_16(%arg0: i32) -> (i32, i32) {
    %c0_i32 = arith.constant 0 : i32
    %c0_i32_0 = arith.constant 0 : i32
    %c0_i32_1 = arith.constant 0 : i32
    return %c0_i32, %c0_i32_0 : i32, i32
  }
  func.func @transform_17(%arg0: i32) -> (i32, i32) {
    %c0_i32 = arith.constant 0 : i32
    %c0_i32_0 = arith.constant 0 : i32
    %c0_i32_1 = arith.constant 0 : i32
    return %c0_i32, %c0_i32_0 : i32, i32
  }
  func.func @transform_18(%arg0: i32) -> (i32, i32) {
    %c0_i32 = arith.constant 0 : i32
    %c0_i32_0 = arith.constant 0 : i32
    %c0_i32_1 = arith.constant 0 : i32
    return %c0_i32, %c0_i32_0 : i32, i32
  }
}

</mosaic_0001>

<bundles_post_ra>
// kernel: vit_forward.1
= control target key start
LH: loop header
LB: loop body
LE: loop exit
PB: predicated region body
PF: predicated region fallthrough
CT: control target
= control target key end

     0   :  { %s3443_s0 = inlined_call_operand.vmem [shape: f32[2,8,192], index: 0, kind: input, shape index: {}]   ;;  %s3444_s1 = inlined_call_operand.vmem [shape: bf16[192,32], index: 1, kind: input, shape index: {}]   ;;  %s3445_s2 = inlined_call_operand.vmem [shape: f32[8,32], index: 2, kind: input, shape index: {}]   ;;  %s3446_s3 = inlined_call_operand.vmem [shape: f32[1,8], index: 3, kind: input, shape index: {}]   ;;  %s3447_s4 = inlined_call_operand.vmem [shape: f32[2,1,32], index: 4, kind: input, shape index: {}]   ;;  %s3448_s5 = inlined_call_operand.vmem [shape: f32[2,1,32], index: 5, kind: input, shape index: {}]   ;;  %s3449_s6 = inlined_call_operand.vmem [shape: bf16[2,32,96], index: 6, kind: input, shape index: {}]   ;;  %s3450_s7 = inlined_call_operand.vmem [shape: f32[2,1,96], index: 7, kind: input, shape index: {}]   ;;  %s3451_s8 = inlined_call_operand.vmem [shape: bf16[2,32,32], index: 8, kind: input, shape index: {}]   ;;  %s3452_s9 = inlined_call_operand.vmem [shape: f32[2,1,32], index: 9, kind: input, shape index: {}]   ;;  %s3453_s10 = inlined_call_operand.vmem [shape: f32[2,1,32], index: 10, kind: input, shape index: {}]   ;;  %s3454_s11 = inlined_call_operand.vmem [shape: f32[2,1,32], index: 11, kind: input, shape index: {}]   ;;  %s3455_s12 = inlined_call_operand.vmem [shape: bf16[2,32,128], index: 12, kind: input, shape index: {}]   ;;  %s3456_s13 = inlined_call_operand.vmem [shape: f32[2,1,128], index: 13, kind: input, shape index: {}]   ;;  %s3457_s14 = inlined_call_operand.vmem [shape: bf16[2,128,32], index: 14, kind: input, shape index: {}]   ;;  %s3458_s15 = inlined_call_operand.vmem [shape: f32[2,1,32], index: 15, kind: input, shape index: {}]   ;;  %s3459_s16 = inlined_call_operand.vmem [shape: f32[1,32], index: 16, kind: input, shape index: {}]   ;;  %s3460_s17 = inlined_call_operand.vmem [shape: f32[1,32], index: 17, kind: input, shape index: {}]   ;;  %s3461_s18 = inlined_call_operand.hbm [shape: f32[2,32], index: 18, kind: output, shape index: {}]  }
   0x1   :  { %3467 = sst [smem:[#allocation8_spill]] %s3443_s0 }
   0x2   :  { %3468 = sst [smem:[#allocation9_spill]] %s3444_s1 }
   0x3   :  { %3469 = sst [smem:[#allocation10_spill]] %s3445_s2 }
   0x4   :  { %3470 = sst [smem:[#allocation11_spill]] %s3449_s6 }
   0x5   :  { %3471 = sst [smem:[#allocation12_spill]] %s3451_s8 }
   0x6   :  { %3472 = sst [smem:[#allocation13_spill]] %s3459_s16 }
   0x7   :  { %3473 = sst [smem:[#allocation14_spill]] %s3460_s17 }
   0x8   :  { %3474 = sst [smem:[#allocation15_spill]] %s3461_s18 }
   0x9   :  { %23 = vsyncpa [#allocation4], 0  ;;  %s3013_s27 = smov 0  }
   0xa LB: > { %3475 = sst [smem:[#allocation6_spill]] %s2898_s27  ;;  %s3019_s28 = sadd.s32 4294967295, %s2898_s27   ;;  %s2898_s27 = sphi %s3013_s27, %s29_s27  }
   0xb   : > { %p2477_p0 = scmp.ge.s32.totalorder %s2898_s27, 1  ;;  %p602_p1 = scmp.lt.s32.totalorder %s2898_s27, 3 }
   0xd   : > { %p603_p2 = pnand %p2477_p0, %p602_p1 }
   0xf   : > { %606 = sbr.rel (%p603_p2) target bundleno = 4369 (0x1111), region = 92 }
  0x16   : > { %p690_p3 = scmp.lt.s32.totalorder %s3019_s28, 1  ;;  %s3476_s6 = sld [smem:[#allocation11_spill]] }
  0x17   : > { %s3477_s8 = sld [smem:[#allocation12_spill]]  ;;  %p2486_p4 = scmp.ne.s32.totalorder %s3019_s28, 0 }
  0x18   : > { %s3025_s29 = scalar_select %p690_p3, %s3019_s28, 1 }
  0x19   : > { %738 = sbr.rel (%p2486_p4) target bundleno = 296 (0x128), region = 96  ;;  %s3479_s25 = sld [smem:[#allocation9_spill]] (!%p2486_p4)  ;;  %v2900_v1 = vmov (!%p2486_p4), 0   ;;  %vm841_vm0 = vcmask (!%p2486_p4), 523264   ;;  %vm889_vm1 = vcmask (!%p2486_p4), 261120  }
  0x1a   : > { %s2549_s22 = sshll.u32 %s3025_s29, 4  ;;  %s714_s16 = scalar_lea.vmem %s3453_s10, %s3025_s29  ;;  %845 = vmatprep.subr.bf16.mxu0 (!%p2486_p4), %v2900_v1 }
  0x1b   : > { %s717_s24 = scalar_lea.vmem %s3454_s11, %s3025_s29  ;;  %s3480_s23 = sld [smem:[#allocation8_spill]] (!%p2486_p4) }
  0x1c   : > { %s3043_s30 = scalar_lea.vmem %s3476_s6, %s2549_s22  ;;  %s3065_s6 = scalar_lea.vmem %s3455_s12, %s2549_s22 }
  0x1d   : > { %s3048_s18 = scalar_lea.vmem %s3477_s8, %s2549_s22  ;;  %s725_s8 = scalar_lea.vmem %s3456_s13, %s3025_s29 }
  0x1e   : > { %3478 = sst [smem:[#allocation7_spill]] %s3048_s18  ;;  %s2552_s18 = sshll.u32 %s3025_s29, 6 }
  0x1f   : > { %s3075_s1 = scalar_lea.vmem %s3457_s14, %s2552_s18  ;;  %v2775_v0 = vld [vmem:[%s3479_s25] sm:$0xff] (!%p2486_p4)   ;;  %v2776_v2 = vld [vmem:[%s3479_s25 + $0x8] sm:$0xff] (!%p2486_p4)   ;;  %v2777_v3 = vld [vmem:[%s3479_s25 + $0x10] sm:$0xff] (!%p2486_p4)   ;;  %s3481_s17 = sld [smem:[#allocation10_spill]] (!%p2486_p4) }
  0x20   : > { %846 = vmatpush1.bf16.msra.mxu0 %v2775_v0  ;;  %v2778_v4 = vld [vmem:[%s3479_s25 + $0x18] sm:$0xff]   ;;  %v2779_v8 = vld [vmem:[%s3479_s25 + $0x20] sm:$0xff]   ;;  %v2780_v9 = vld [vmem:[%s3479_s25 + $0x28] sm:$0xff]  }
  0x21   : > { %847 = vmatprep.subr.bf16.mxu0 %v2900_v1  ;;  %v740_v5 = vld [vmem:[%s3480_s23 + $0x8] sm:$0xff]  ;;  %v742_v6 = vld [vmem:[%s3480_s23 + $0x18] sm:$0xff]  ;;  %v2781_v10 = vld [vmem:[%s3479_s25 + $0x30] sm:$0xff]  }
  0x22   : > { %v744_v7 = vpack.c.bf16 %v742_v6, %v740_v5  ;;  %v2782_v11 = vld [vmem:[%s3479_s25 + $0x38] sm:$0xff]   ;;  %v2783_v12 = vld [vmem:[%s3479_s25 + $0x40] sm:$0xff]   ;;  %v2784_v13 = vld [vmem:[%s3479_s25 + $0x48] sm:$0xff]  }
  0x23   : > { %v2785_v14 = vld [vmem:[%s3479_s25 + $0x50] sm:$0xff]   ;;  %v2786_v15 = vld [vmem:[%s3479_s25 + $0x58] sm:$0xff]   ;;  %v739_v16 = vld [vmem:[%s3480_s23] sm:$0xff] }
  0x24   : > { %848 = vmatpush1.bf16.msra.mxu0 %v2776_v2  ;;  %2499 = vmatprep.mubr.msk.bf16.mxu0 %vm841_vm0, %v744_v7  ;;  %v741_v17 = vld [vmem:[%s3480_s23 + $0x10] sm:$0xff] }
  0x25   : > { %849 = vmatprep.subr.bf16.mxu0 %v2900_v1  ;;  %v743_v18 = vpack.c.bf16 %v741_v17, %v739_v16  ;;  %v886_v19 = vld [vmem:[%s3481_s17] sm:$0xff] }
  0x28   : > { %850 = vmatpush1.bf16.msra.mxu0 %v2777_v3 }
  0x29   : > { %851 = vmatprep.subr.bf16.mxu0 %v2900_v1 }
  0x2c   : > { %852 = vmatpush1.bf16.msra.mxu0 %v2778_v4 }
  0x2d   : > { %853 = vmatprep.subr.bf16.mxu0 %v2900_v1 }
  0x30   : > { %854 = vmatpush1.bf16.msra.mxu0 %v2779_v8 }
  0x31   : > { %855 = vmatprep.subr.bf16.mxu0 %v2900_v1 }
  0x34   : > { %856 = vmatpush1.bf16.msra.mxu0 %v2780_v9 }
  0x35   : > { %857 = vmatprep.subr.bf16.mxu0 %v2900_v1 }
  0x38   : > { %858 = vmatpush1.bf16.msra.mxu0 %v2781_v10 }
  0x39   : > { %859 = vmatprep.subr.bf16.mxu0 %v2900_v1 }
  0x3c   : > { %860 = vmatpush1.bf16.msra.mxu0 %v2782_v11 }
  0x3d   : > { %861 = vmatprep.subr.bf16.mxu0 %v2900_v1 }
  0x40   : > { %862 = vmatpush1.bf16.msra.mxu0 %v2783_v12 }
  0x41   : > { %863 = vmatprep.subr.bf16.mxu0 %v2900_v1 }
  0x44   : > { %864 = vmatpush1.bf16.msra.mxu0 %v2784_v13 }
  0x45   : > { %865 = vmatprep.subr.bf16.mxu0 %v2900_v1 }
  0x48   : > { %866 = vmatpush1.bf16.msra.mxu0 %v2785_v14 }
  0x49   : > { %867 = vmatprep.subr.bf16.mxu0 %v2900_v1 }
  0x4c   : > { %868 = vmatpush1.bf16.msra.mxu0 %v2786_v15 }
  0x4f   : > { %878 = vmatmul.mubr.bf16.vlgmr.msra.gmra.mrb[0].mxu0 %v743_v18 }
 0x122   : > { %v879_v20 = vpop.f32.mrb[0].mxu0 }
 0x123   : > { %v887_v21 = vadd.f32 %v886_v19, %v879_v20  ;;  %v881_v22 = vpop.f32.mrb[1].mxu0 }
 0x124   : > { %v882_v23 = vpop.f32.mrb[2].mxu0 }
 0x125   : > { %890 = vst.msk [vmem:[#allocation2] sm:$0xff] %vm889_vm1, %v887_v21  ;;  %v888_v24 = vadd.f32 %v886_v19, %v882_v23  ;;  %v884_v25 = vpop.f32.mrb[3].mxu0 }
 0x127   : > { %891 = vst.msk [vmem:[#allocation2 + $0x8] sm:$0xff] %vm889_vm1, %v888_v24 }
 0x128 PF: > { %vm896_vm2 = vcmask 261120   ;;  %v2802_v34 = vld [vmem:[%s3043_s30] sm:$0xff]   ;;  %v2901_v35 = vmov 0.0   ;;  %vm2902_vm3 = vmmov 0   ;;  %v2803_v36 = vld [vmem:[%s3043_s30 + $0x8] sm:$0xff]   ;;  %s3482_s19 = scalar_lea.vmem %s3447_s4, %s3025_s29  ;;  %s3483_s22 = scalar_lea.vmem %s3448_s5, %s3025_s29  ;;  %vm1024_vm4 = vcmask 64512  }
 0x129   : > { %2603 = vmatprep.subr.bf16.mxu0 %v2901_v35  ;;  %2607 = vmatprep.mubr.msk.bf16.mxu0 %vm2902_vm3, %v2901_v35  ;;  %v2500_v54 = vld [vmem:[%s3482_s19] ss:$0 sm:$0xff]  ;;  %s3484_s18 = scalar_lea.vmem %s3450_s7, %s3025_s29  ;;  %s2903_s0 = smov 96   ;;  %vm1149_vm5 = vcmask 1043456   ;;  %vm1927_vm6 = vcmask 130048   ;;  %vm1930_vm7 = vcmask 195584  }
 0x12a   : > { %2604 = vmatpush3.bf16.msra.mxu0 %v2802_v34  ;;  %2623 = vmatprep.subr.bf16.mxu1 %v2901_v35  ;;  %v2501_v59 = vld [vmem:[%s3483_s22] ss:$0 sm:$0xff]  ;;  %s2904_s2 = smov 64   ;;  %s2905_s19 = smov 88  }
 0x12b   : > { %2605 = vmatprep.subr.bf16.mxu0 %v2901_v35  ;;  %2625 = vmatprep.mubr.msk.bf16.mxu1 %vm2902_vm3, %v2901_v35  ;;  %v2502_v0 = vld [vmem:[%s3484_s18] ss:$0 sm:$0xff]  ;;  %s2906_s21 = smov 120   ;;  %s2907_s20 = smov 56  }
 0x12c   : > { %v3133_v26 = vld [vmem:[#allocation2] sm:$0xff]  ;;  %s2908_s22 = smov 80   ;;  %s2909_s26 = smov 112  }
 0x12d   : > { %v897_v28 = vsel %vm896_vm2, %v3133_v26, 0.0  ;;  %v906_v29 = vmul.f32 %v3133_v26, %v3133_v26  ;;  %v3198_v13 = vld [vmem:[%s3446_s3] ss:$0 sm:$0xff]  ;;  %s2910_s27 = smov 48   ;;  %s2911_s18 = smov 72  }
 0x12e   : > { %v3135_v27 = vld [vmem:[#allocation2 + $0x8] sm:$0xff]  ;;  %898 = vadd.xlane.f32.xlu0 %v897_v28  ;;  %2606 = vmatpush3.bf16.msra.mxu0 %v2803_v36  ;;  %s2913_s17 = smov 40   ;;  %s2914_s30 = smov 8  }
 0x12f   : > { %v900_v30 = vsel %vm896_vm2, %v3135_v27, 0.0  ;;  %v907_v31 = vmul.f32 %v3135_v27, %v3135_v27  ;;  %v908_v32 = vsel %vm896_vm2, %v906_v29, 0.0  ;;  %2611 = vmatprep.subr.bf16.mxu0 %v2901_v35  ;;  %p2542_p5 = scmp.ne.s32.totalorder %s3019_s28, 1 }
 0x130   : > { %909 = vadd.xlane.f32.xlu1 %v908_v32  ;;  %vm2263_vm8 = vcmask (!%p2542_p5), 1041409   ;;  %vm2266_vm9 = vcmask (!%p2542_p5), 254976  }
 0x131   : > { %v911_v33 = vsel %vm896_vm2, %v907_v31, 0.0 }
 0x132   : > { %901 = vadd.xlane.f32.xlu0 %v900_v30 }
 0x134   : > { %912 = vadd.xlane.f32.xlu1 %v911_v33 }
 0x1bb   : > { %v899_v37 = vpop.xlane.xlu0 %898 }
 0x1bc   : > { %v904_v38 = vmul.f32 0.03125, %v899_v37 }
 0x1bd   : > { %v910_v39 = vpop.xlane.xlu1 %909 }
 0x1be   : > { %v916_v40 = vmul.f32 %v904_v38, %v904_v38  ;;  %v914_v41 = vmul.f32 0.03125, %v910_v39  ;;  %v920_v51 = vsub.f32 %v3133_v26, %v904_v38 }
 0x1bf   : > { %v902_v42 = vpop.xlane.xlu0 %901 }
 0x1c0   : > { %v918_v43 = vsub.f32 %v914_v41, %v916_v40  ;;  %v905_v44 = vmul.f32 0.03125, %v902_v42 }
 0x1c1   : > { %v913_v45 = vpop.xlane.xlu1 %912 }
 0x1c2   : > { %v922_v46 = vadd.f32 1e-06, %v918_v43  ;;  %v917_v47 = vmul.f32 %v905_v44, %v905_v44  ;;  %v915_v48 = vmul.f32 0.03125, %v913_v45  ;;  %v921_v55 = vsub.f32 %v3135_v27, %v905_v44 }
 0x1c4   : > { %2816 = vrsqrt.f32 %v922_v46  ;;  %v919_v49 = vsub.f32 %v915_v48, %v917_v47 }
 0x1c6   : > { %v923_v50 = vadd.f32 1e-06, %v919_v49 }
 0x1c8   : > { %2818 = vrsqrt.f32 %v923_v50 }
 0x1ce   : > { %v2817_v52 = vpop.eup %2816 }
 0x1cf   : > { %v926_v53 = vmul.f32 %v2817_v52, %v920_v51 }
 0x1d1   : > { %v934_v58 = vmul.f32 %v2500_v54, %v926_v53 }
 0x1d2   : > { %v2819_v56 = vpop.eup %2818 }
 0x1d3   : > { %v927_v57 = vmul.f32 %v2819_v56, %v921_v55  ;;  %v942_v61 = vadd.f32 %v2501_v59, %v934_v58 }
 0x1d5   : > { %v935_v60 = vmul.f32 %v2500_v54, %v927_v57 }
 0x1d7   : > { %v943_v62 = vadd.f32 %v2501_v59, %v935_v60 }
 0x1d9   : > { %v944_v63 = vpack.c.bf16 %v943_v62, %v942_v61 }
 0x1db   : > { %2608 = vmatmul.mubr.msk.bf16.vlgmr.msra.gmra.mrb[0].mxu0 %vm896_vm2, %v944_v63 }
 0x1dc   : > { %2613 = vmatprep.mubr.msk.bf16.mxu0 %vm2902_vm3, %v2901_v35 }
 0x2ae   : > { %v1005_v1 = vpop.f32.mrb[0].mxu0 }
 0x2af   : > { %v1006_v2 = vadd.f32 %v2502_v0, %v1005_v1  ;;  %v2609_v3 = vpop.f32.mrb[1].mxu0 }
 0x2b0   : > { %v1008_v4 = vpop.f32.mrb[2].mxu0 }
 0x2b1   : > { %v3177_v5 = vpack.c.bf16 %v1006_v2, %v1006_v2  ;;  %v1009_v6 = vadd.f32 %v2502_v0, %v1008_v4  ;;  %v2610_v7 = vpop.f32.mrb[3].mxu0 }
 0x2b3   : > { %v3179_v8 = vpack.c.bf16 %v1009_v6, %v1009_v6  ;;  %1022 = vrot.lane.b32.xlu0 %v3177_v5, %s2903_s0 }
 0x2b5   : > { %1072 = vrot.lane.b32.xlu1 %v3179_v8, %s2903_s0  ;;  %s2912_s0 = smov 104  }
 0x325   : > { %v1023_v9 = vpop.permute.xlu0 %1022 }
 0x326   : > { %v1029_v10 = vsel %vm1024_vm4, %v1023_v9, 0 }
 0x327   : > { %2612 = vmatpush3.bf16.xpose.msra.mxu0 %v1029_v10  ;;  %v1073_v11 = vpop.permute.xlu1 %1072 }
 0x328   : > { %2617 = vmatprep.subr.bf16.mxu0 %v2901_v35  ;;  %v1078_v12 = vsel %vm1024_vm4, %v1073_v11, 0 }
 0x32e   : > { %2614 = vmatmul.mubr.msk.bf16.vlgmr.msra.gmra.mrb[4].mxu0 %vm1024_vm4, %v3177_v5 }
 0x32f   : > { %2618 = vmatpush3.bf16.xpose.msra.mxu0 %v1078_v12  ;;  %2619 = vmatprep.mubr.msk.bf16.mxu0 %vm2902_vm3, %v2901_v35 }
 0x330   : > { %2629 = vmatprep.subr.bf16.mxu0 %v2901_v35 }
 0x336   : > { %2620 = vmatmul.mubr.msk.bf16.vlgmr.msra.gmra.mrb[8].mxu0 %vm1024_vm4, %v3179_v8 }
 0x337   : > { %2631 = vmatprep.mubr.msk.bf16.mxu0 %vm2902_vm3, %v2901_v35 }
 0x401   : > { %v1065_v14 = vpop.f32.mrb[4].mxu0 }
 0x402   : > { %v1066_v15 = vadd.f32 %v3198_v13, %v1065_v14  ;;  %v2615_v16 = vpop.f32.mrb[5].mxu0 }
 0x403   : > { %v1068_v17 = vpop.f32.mrb[6].mxu0 }
 0x404   : > { %v2616_v18 = vpop.f32.mrb[7].mxu0  ;;  %v1120_v19 = vsel %vm1024_vm4, %v1066_v15, -inf }
 0x405   : > { %1121 = vmax.xlane.f32.xlu1 %v1120_v19 }
 0x409   : > { %v1114_v20 = vpop.f32.mrb[8].mxu0 }
 0x40a   : > { %v1115_v21 = vadd.f32 %v3198_v13, %v1114_v20  ;;  %v2621_v22 = vpop.f32.mrb[9].mxu0 }
 0x40b   : > { %v1117_v23 = vpop.f32.mrb[10].mxu0 }
 0x40c   : > { %v2622_v24 = vpop.f32.mrb[11].mxu0  ;;  %v1123_v25 = vsel %vm1024_vm4, %v1115_v21, -inf }
 0x40d   : > { %1124 = vmax.xlane.f32.xlu0 %v1123_v25 }
 0x416   : > { %1193 = vrot.lane.b32.xlu1 %v3179_v8, %s2904_s2 }
 0x41a   : > { %1243 = vrot.lane.b32.xlu1 %v3177_v5, %s2905_s19 }
 0x492   : > { %v1122_v28 = vpop.xlane.xlu1 %1121 }
 0x493   : > { %v1126_v29 = vsub.f32 %v1066_v15, %v1122_v28 }
 0x495   : > { %v1128_v30 = vmul.f32 1.442695, %v1126_v29 }
 0x496   : > { %v1194_v31 = vpop.permute.xlu1 %1193 }
 0x497   : > { %2820 = vpow2.f32 %v1128_v30  ;;  %v1199_v32 = vsel %vm1149_vm5, %v1194_v31, 0 }
 0x498   : > { %2630 = vmatpush3.bf16.msra.mxu0 %v1199_v32 }
 0x499   : > { %2641 = vmatprep.subr.bf16.mxu0 %v2901_v35 }
 0x49a   : > { %v1125_v33 = vpop.xlane.xlu0 %1124  ;;  %v1244_v42 = vpop.permute.xlu1 %1243 }
 0x49b   : > { %v1127_v34 = vsub.f32 %v1115_v21, %v1125_v33  ;;  %v1249_v49 = vsel %vm1024_vm4, %v1244_v42, 0 }
 0x49d   : > { %v1130_v36 = vmul.f32 1.442695, %v1127_v34 }
 0x49f   : > { %2822 = vpow2.f32 %v1130_v36 }
 0x4a1   : > { %v2821_v37 = vpop.eup %2820 }
 0x4a2   : > { %v1132_v38 = vsel %vm1024_vm4, %v2821_v37, 0.0 }
 0x4a3   : > { %1133 = vadd.xlane.f32.xlu0 %v1132_v38 }
 0x4a9   : > { %v2823_v39 = vpop.eup %2822 }
 0x4aa   : > { %v1135_v40 = vsel %vm1024_vm4, %v2823_v39, 0.0 }
 0x4ab   : > { %1136 = vadd.xlane.f32.xlu1 %v1135_v40 }
 0x4b9   : > { %1144 = vrot.lane.b32.xlu0 %v3177_v5, %s2904_s2  ;;  %s2915_s2 = smov 16  }
 0x4bc   : > { %1293 = vrot.lane.b32.xlu1 %v3179_v8, %s2905_s19  ;;  %s3485_s19 = sld [smem:[#allocation7_spill]] }
 0x4bd   : > { %1241 = vrot.lane.b32.xlu0 %v3177_v5, %s2906_s21 }
 0x4c0   : > { %1291 = vrot.lane.b32.xlu1 %v3179_v8, %s2906_s21  ;;  %s2916_s21 = smov 24  }
 0x530   : > { %v1134_v41 = vpop.xlane.xlu0 %1133 }
 0x531   : > { %2824 = vrcp.f32 %v1134_v41 }
 0x534   : > { %v1145_v43 = vpop.permute.xlu0 %1144 }
 0x535   : > { %v1151_v44 = vsel %vm1149_vm5, %v1145_v43, 0 }
 0x536   : > { %2624 = vmatpush3.bf16.msra.mxu1 %v1151_v44 }
 0x537   : > { %2635 = vmatprep.subr.bf16.mxu1 %v2901_v35 }
 0x538   : > { %v1137_v45 = vpop.xlane.xlu1 %1136  ;;  %v1242_v54 = vpop.permute.xlu0 %1241 }
 0x539   : > { %2826 = vrcp.f32 %v1137_v45 }
 0x53b   : > { %v2825_v46 = vpop.eup %2824 }
 0x53c   : > { %v1140_v47 = vmul.f32 %v2825_v46, %v2821_v37  ;;  %v1294_v52 = vpop.permute.xlu1 %1293 }
 0x53d   : > { %v1299_v55 = vsel %vm1024_vm4, %v1294_v52, 0 }
 0x53e   : > { %v1142_v48 = vpack.c.bf16 %v1140_v47, %v1140_v47 }
 0x540   : > { %2626 = vmatmul.mubr.msk.bf16.vlgmr.msra.gmra.mrb[0].mxu1 %vm1024_vm4, %v1142_v48  ;;  %v1292_v56 = vpop.permute.xlu1 %1291 }
 0x541   : > { %2636 = vmatpush3.bf16.xpose.msra.mxu1 %v1249_v49  ;;  %2637 = vmatprep.mubr.msk.bf16.mxu1 %vm2902_vm3, %v2901_v35 }
 0x542   : > { %2647 = vmatprep.subr.bf16.mxu1 %v2901_v35 }
 0x543   : > { %v2827_v50 = vpop.eup %2826 }
 0x544   : > { %v1141_v51 = vmul.f32 %v2827_v50, %v2823_v39 }
 0x546   : > { %v1143_v53 = vpack.c.bf16 %v1141_v51, %v1141_v51 }
 0x548   : > { %2632 = vmatmul.mubr.msk.bf16.vlgmr.msra.gmra.mrb[12].mxu0 %vm1024_vm4, %v1143_v53  ;;  %2638 = vmatmul.mubr.msk.bf16.vlgmr.msra.gmra.mrb[4].mxu1 %vm1024_vm4, %v1242_v54 }
 0x549   : > { %2642 = vmatpush3.bf16.xpose.msra.mxu0 %v1299_v55  ;;  %2643 = vmatprep.mubr.msk.bf16.mxu0 %vm2902_vm3, %v2901_v35 }
 0x54a   : > { %2653 = vmatprep.subr.bf16.mxu0 %v2901_v35  ;;  %2649 = vmatprep.mubr.msk.bf16.mxu1 %vm2902_vm3, %v2901_v35 }
 0x550   : > { %2644 = vmatmul.mubr.msk.bf16.vlgmr.msra.gmra.mrb[16].mxu0 %vm1024_vm4, %v1292_v56 }
 0x551   : > { %2655 = vmatprep.mubr.msk.bf16.mxu0 %vm2902_vm3, %v2901_v35 }
 0x613   : > { %v3232_v57 = vpop.f32.mrb[0].mxu1 }
 0x614   : > { %v2627_v58 = vpop.f32.mrb[1].mxu1 }
 0x615   : > { %v1190_v59 = vpop.f32.mrb[2].mxu1 }
 0x616   : > { %v2628_v60 = vpop.f32.mrb[3].mxu1 }
 0x61b   : > { %v3234_v61 = vpop.f32.mrb[12].mxu0  ;;  %v1285_v62 = vpop.f32.mrb[4].mxu1 }
 0x61c   : > { %v1286_v63 = vadd.f32 %v3198_v13, %v1285_v62  ;;  %v2633_v0 = vpop.f32.mrb[13].mxu0  ;;  %v2639_v1 = vpop.f32.mrb[5].mxu1 }
 0x61d   : > { %v1238_v2 = vpop.f32.mrb[14].mxu0  ;;  %v1288_v3 = vpop.f32.mrb[6].mxu1 }
 0x61e   : > { %v2634_v4 = vpop.f32.mrb[15].mxu0  ;;  %v2640_v6 = vpop.f32.mrb[7].mxu1  ;;  %v1341_v7 = vsel %vm1024_vm4, %v1286_v63, -inf }
 0x61f   : > { %1342 = vmax.xlane.f32.xlu0 %v1341_v7 }
 0x623   : > { %v1335_v9 = vpop.f32.mrb[16].mxu0 }
 0x624   : > { %v1336_v10 = vadd.f32 %v3198_v13, %v1335_v9  ;;  %v2645_v11 = vpop.f32.mrb[17].mxu0 }
 0x625   : > { %v1338_v12 = vpop.f32.mrb[18].mxu0 }
 0x626   : > { %v2646_v14 = vpop.f32.mrb[19].mxu0  ;;  %v1344_v15 = vsel %vm1024_vm4, %v1336_v10, -inf }
 0x627   : > { %1345 = vmax.xlane.f32.xlu1 %v1344_v15 }
 0x638   : > { %1413 = vrot.lane.b32.xlu1 %v3179_v8, %s2907_s20 }
 0x63c   : > { %1463 = vrot.lane.b32.xlu1 %v3177_v5, %s2908_s22 }
 0x640   : > { %1513 = vrot.lane.b32.xlu1 %v3179_v8, %s2908_s22 }
 0x644   : > { %1511 = vrot.lane.b32.xlu1 %v3179_v8, %s2909_s26 }
 0x6ac   : > { %v1343_v16 = vpop.xlane.xlu0 %1342 }
 0x6ad   : > { %v1347_v17 = vsub.f32 %v1286_v63, %v1343_v16 }
 0x6af   : > { %v1349_v18 = vmul.f32 1.442695, %v1347_v17 }
 0x6b1   : > { %2828 = vpow2.f32 %v1349_v18 }
 0x6b4   : > { %v1346_v19 = vpop.xlane.xlu1 %1345 }
 0x6b5   : > { %v1348_v20 = vsub.f32 %v1336_v10, %v1346_v19 }
 0x6b7   : > { %v1351_v21 = vmul.f32 1.442695, %v1348_v20 }
 0x6b8   : > { %v1414_v22 = vpop.permute.xlu1 %1413 }
 0x6b9   : > { %2830 = vpow2.f32 %v1351_v21  ;;  %v1419_v23 = vsel %vm1149_vm5, %v1414_v22, 0 }
 0x6ba   : > { %2654 = vmatpush3.bf16.msra.mxu0 %v1419_v23 }
 0x6bb   : > { %v2829_v24 = vpop.eup %2828  ;;  %2665 = vmatprep.subr.bf16.mxu0 %v2901_v35 }
 0x6bc   : > { %v1353_v25 = vsel %vm1024_vm4, %v2829_v24, 0.0  ;;  %v1464_v38 = vpop.permute.xlu1 %1463 }
 0x6bd   : > { %1354 = vadd.xlane.f32.xlu0 %v1353_v25  ;;  %v1469_v42 = vsel %vm1024_vm4, %v1464_v38, 0 }
 0x6c0   : > { %v1514_v41 = vpop.permute.xlu1 %1513 }
 0x6c1   : > { %v1519_v44 = vsel %vm1024_vm4, %v1514_v41, 0 }
 0x6c3   : > { %v2831_v28 = vpop.eup %2830 }
 0x6c4   : > { %v1356_v29 = vsel %vm1024_vm4, %v2831_v28, 0.0  ;;  %v1512_v46 = vpop.permute.xlu1 %1511 }
 0x6c5   : > { %1357 = vadd.xlane.f32.xlu0 %v1356_v29 }
 0x6db   : > { %1365 = vrot.lane.b32.xlu0 %v3177_v5, %s2907_s20  ;;  %s3489_s20 = sld [smem:[#allocation14_spill]] (!%p2542_p5) }
 0x6df   : > { %1461 = vrot.lane.b32.xlu0 %v3177_v5, %s2909_s26  ;;  %s3486_s26 = scalar_lea.vmem %s3452_s9, %s3025_s29 }
 0x74a   : > { %v1355_v30 = vpop.xlane.xlu0 %1354 }
 0x74b   : > { %2832 = vrcp.f32 %v1355_v30 }
 0x752   : > { %v1358_v31 = vpop.xlane.xlu0 %1357 }
 0x753   : > { %2834 = vrcp.f32 %v1358_v31 }
 0x755   : > { %v2833_v32 = vpop.eup %2832 }
 0x756   : > { %v1361_v33 = vmul.f32 %v2833_v32, %v2829_v24  ;;  %v1366_v34 = vpop.permute.xlu0 %1365 }
 0x757   : > { %v1371_v36 = vsel %vm1149_vm5, %v1366_v34, 0 }
 0x758   : > { %2648 = vmatpush3.bf16.msra.mxu1 %v1371_v36  ;;  %v1363_v37 = vpack.c.bf16 %v1361_v33, %v1361_v33 }
 0x759   : > { %2659 = vmatprep.subr.bf16.mxu1 %v2901_v35 }
 0x75a   : > { %v1462_v45 = vpop.permute.xlu0 %1461 }
 0x75b   : > { %2650 = vmatmul.mubr.msk.bf16.vlgmr.msra.gmra.mrb[8].mxu1 %vm1024_vm4, %v1363_v37 }
 0x75c   : > { %2661 = vmatprep.mubr.msk.bf16.mxu1 %vm2902_vm3, %v2901_v35 }
 0x75d   : > { %v2835_v39 = vpop.eup %2834 }
 0x75e   : > { %v1362_v40 = vmul.f32 %v2835_v39, %v2831_v28 }
 0x760   : > { %v1364_v43 = vpack.c.bf16 %v1362_v40, %v1362_v40 }
 0x761   : > { %2660 = vmatpush3.bf16.xpose.msra.mxu1 %v1469_v42 }
 0x762   : > { %2656 = vmatmul.mubr.msk.bf16.vlgmr.msra.gmra.mrb[20].mxu0 %vm1024_vm4, %v1364_v43  ;;  %2671 = vmatprep.subr.bf16.mxu1 %v2901_v35 }
 0x763   : > { %2666 = vmatpush3.bf16.xpose.msra.mxu0 %v1519_v44  ;;  %2667 = vmatprep.mubr.msk.bf16.mxu0 %vm2902_vm3, %v2901_v35 }
 0x764   : > { %2677 = vmatprep.subr.bf16.mxu0 %v2901_v35 }
 0x768   : > { %2662 = vmatmul.mubr.msk.bf16.vlgmr.msra.gmra.mrb[12].mxu1 %vm1024_vm4, %v1462_v45 }
 0x769   : > { %2673 = vmatprep.mubr.msk.bf16.mxu1 %vm2902_vm3, %v2901_v35 }
 0x76a   : > { %2668 = vmatmul.mubr.msk.bf16.vlgmr.msra.gmra.mrb[24].mxu0 %vm1024_vm4, %v1512_v46 }
 0x76b   : > { %2679 = vmatprep.mubr.msk.bf16.mxu0 %vm2902_vm3, %v2901_v35 }
 0x82e   : > { %v3268_v47 = vpop.f32.mrb[8].mxu1 }
 0x82f   : > { %v2651_v48 = vpop.f32.mrb[9].mxu1 }
 0x830   : > { %v1410_v49 = vpop.f32.mrb[10].mxu1 }
 0x831   : > { %v2652_v50 = vpop.f32.mrb[11].mxu1 }
 0x835   : > { %v3270_v51 = vpop.f32.mrb[20].mxu0 }
 0x836   : > { %v2787_v52 = vpack.i.bf16 %v3270_v51, %v3268_v47  ;;  %v2657_v53 = vpop.f32.mrb[21].mxu0 }
 0x837   : > { %v1458_v54 = vpop.f32.mrb[22].mxu0 }
 0x838   : > { %v2658_v55 = vpop.f32.mrb[23].mxu0 }
 0x83b   : > { %v1505_v56 = vpop.f32.mrb[12].mxu1 }
 0x83c   : > { %v1506_v58 = vadd.f32 %v3198_v13, %v1505_v56  ;;  %v2663_v59 = vpop.f32.mrb[13].mxu1 }
 0x83d   : > { %v1508_v60 = vpop.f32.mrb[14].mxu1  ;;  %v1555_v62 = vpop.f32.mrb[24].mxu0 }
 0x83e   : > { %v1556_v63 = vadd.f32 %v3198_v13, %v1555_v62  ;;  %v2664_v0 = vpop.f32.mrb[15].mxu1  ;;  %v2669_v1 = vpop.f32.mrb[25].mxu0  ;;  %v1561_v2 = vsel %vm1024_vm4, %v1506_v58, -inf }
 0x83f   : > { %1562 = vmax.xlane.f32.xlu0 %v1561_v2  ;;  %v1558_v3 = vpop.f32.mrb[26].mxu0 }
 0x840   : > { %v2670_v4 = vpop.f32.mrb[27].mxu0  ;;  %v1564_v6 = vsel %vm1024_vm4, %v1556_v63, -inf }
 0x841   : > { %1565 = vmax.xlane.f32.xlu1 %v1564_v6 }
 0x852   : > { %1633 = vrot.lane.b32.xlu1 %v3179_v8, %s2910_s27 }
 0x856   : > { %1683 = vrot.lane.b32.xlu1 %v3177_v5, %s2911_s18 }
 0x85a   : > { %1733 = vrot.lane.b32.xlu1 %v3179_v8, %s2911_s18 }
 0x85e   : > { %1731 = vrot.lane.b32.xlu1 %v3179_v8, %s2912_s0 }
 0x8cc   : > { %v1563_v7 = vpop.xlane.xlu0 %1562 }
 0x8cd   : > { %v1567_v9 = vsub.f32 %v1506_v58, %v1563_v7 }
 0x8ce   : > { %v1566_v10 = vpop.xlane.xlu1 %1565 }
 0x8cf   : > { %v1569_v11 = vmul.f32 1.442695, %v1567_v9  ;;  %v1568_v12 = vsub.f32 %v1556_v63, %v1566_v10 }
 0x8d1   : > { %2836 = vpow2.f32 %v1569_v11  ;;  %v1571_v14 = vmul.f32 1.442695, %v1568_v12 }
 0x8d2   : > { %v1634_v15 = vpop.permute.xlu1 %1633 }
 0x8d3   : > { %2838 = vpow2.f32 %v1571_v14  ;;  %v1639_v16 = vsel %vm1149_vm5, %v1634_v15, 0 }
 0x8d4   : > { %2678 = vmatpush3.bf16.msra.mxu0 %v1639_v16 }
 0x8d5   : > { %2689 = vmatprep.subr.bf16.mxu0 %v2901_v35 }
 0x8d6   : > { %v1684_v28 = vpop.permute.xlu1 %1683 }
 0x8d7   : > { %v1689_v34 = vsel %vm1024_vm4, %v1684_v28, 0 }
 0x8da   : > { %v1734_v33 = vpop.permute.xlu1 %1733 }
 0x8db   : > { %v2837_v17 = vpop.eup %2836  ;;  %v1739_v37 = vsel %vm1024_vm4, %v1734_v33, 0 }
 0x8dc   : > { %v1573_v18 = vsel %vm1024_vm4, %v2837_v17, 0.0 }
 0x8dd   : > { %v2839_v19 = vpop.eup %2838  ;;  %1574 = vadd.xlane.f32.xlu0 %v1573_v18 }
 0x8de   : > { %v1576_v20 = vsel %vm1024_vm4, %v2839_v19, 0.0  ;;  %v1732_v39 = vpop.permute.xlu1 %1731 }
 0x8e1   : > { %1577 = vadd.xlane.f32.xlu0 %v1576_v20 }
 0x8f7   : > { %1585 = vrot.lane.b32.xlu0 %v3177_v5, %s2910_s27 }
 0x8fb   : > { %1681 = vrot.lane.b32.xlu0 %v3177_v5, %s2912_s0 }
 0x96a   : > { %v1575_v21 = vpop.xlane.xlu0 %1574 }
 0x96b   : > { %2840 = vrcp.f32 %v1575_v21  ;;  %v2804_v21 = vld [vmem:[%s3485_s19] sm:$0xff]  }
 0x96e   : > { %v1578_v22 = vpop.xlane.xlu0 %1577 }
 0x96f   : > { %2842 = vrcp.f32 %v1578_v22  ;;  %v2805_v22 = vld [vmem:[%s3485_s19 + $0x8] sm:$0xff]  }
 0x972   : > { %v1586_v23 = vpop.permute.xlu0 %1585 }
 0x973   : > { %v1591_v24 = vsel %vm1149_vm5, %v1586_v23, 0 }
 0x974   : > { %2672 = vmatpush3.bf16.msra.mxu1 %v1591_v24 }
 0x975   : > { %v2841_v25 = vpop.eup %2840  ;;  %2683 = vmatprep.subr.bf16.mxu1 %v2901_v35 }
 0x976   : > { %v1581_v29 = vmul.f32 %v2841_v25, %v2837_v17  ;;  %v1682_v38 = vpop.permute.xlu0 %1681 }
 0x978   : > { %v1583_v30 = vpack.c.bf16 %v1581_v29, %v1581_v29 }
 0x979   : > { %v2843_v31 = vpop.eup %2842 }
 0x97a   : > { %v1582_v32 = vmul.f32 %v2843_v31, %v2839_v19  ;;  %2674 = vmatmul.mubr.msk.bf16.vlgmr.msra.gmra.mrb[16].mxu1 %vm1024_vm4, %v1583_v30 }
 0x97b   : > { %2685 = vmatprep.mubr.msk.bf16.mxu1 %vm2902_vm3, %v2901_v35 }
 0x97c   : > { %v1584_v36 = vpack.c.bf16 %v1582_v32, %v1582_v32 }
 0x97d   : > { %2684 = vmatpush3.bf16.xpose.msra.mxu1 %v1689_v34 }
 0x97e   : > { %2680 = vmatmul.mubr.msk.bf16.vlgmr.msra.gmra.mrb[28].mxu0 %vm1024_vm4, %v1584_v36  ;;  %2695 = vmatprep.subr.bf16.mxu1 %v2901_v35 }
 0x97f   : > { %2690 = vmatpush3.bf16.xpose.msra.mxu0 %v1739_v37  ;;  %2691 = vmatprep.mubr.msk.bf16.mxu0 %vm2902_vm3, %v2901_v35 }
 0x980   : > { %2701 = vmatprep.subr.bf16.mxu0 %v2901_v35 }
 0x984   : > { %2686 = vmatmul.mubr.msk.bf16.vlgmr.msra.gmra.mrb[20].mxu1 %vm1024_vm4, %v1682_v38 }
 0x985   : > { %2697 = vmatprep.mubr.msk.bf16.mxu1 %vm2902_vm3, %v2901_v35 }
 0x986   : > { %2692 = vmatmul.mubr.msk.bf16.vlgmr.msra.gmra.mrb[32].mxu0 %vm1024_vm4, %v1732_v39 }
 0x987   : > { %2703 = vmatprep.mubr.msk.bf16.mxu0 %vm2902_vm3, %v2901_v35 }
 0xa4d   : > { %v1627_v40 = vpop.f32.mrb[16].mxu1 }
 0xa4e   : > { %v2675_v41 = vpop.f32.mrb[17].mxu1 }
 0xa4f   : > { %v1630_v42 = vpop.f32.mrb[18].mxu1 }
 0xa50   : > { %v2676_v43 = vpop.f32.mrb[19].mxu1 }
 0xa51   : > { %v1675_v44 = vpop.f32.mrb[28].mxu0 }
 0xa52   : > { %v2792_v45 = vpack.i.bf16 %v1675_v44, %v1627_v40  ;;  %v2681_v46 = vpop.f32.mrb[29].mxu0 }
 0xa53   : > { %v1678_v48 = vpop.f32.mrb[30].mxu0 }
 0xa54   : > { %v2682_v49 = vpop.f32.mrb[31].mxu0 }
 0xa57   : > { %v1725_v50 = vpop.f32.mrb[20].mxu1 }
 0xa58   : > { %v1726_v53 = vadd.f32 %v3198_v13, %v1725_v50  ;;  %v2687_v54 = vpop.f32.mrb[21].mxu1 }
 0xa59   : > { %v1728_v55 = vpop.f32.mrb[22].mxu1  ;;  %v1775_v56 = vpop.f32.mrb[32].mxu0 }
 0xa5a   : > { %v1776_v58 = vadd.f32 %v3198_v13, %v1775_v56  ;;  %v2688_v59 = vpop.f32.mrb[23].mxu1  ;;  %v2693_v60 = vpop.f32.mrb[33].mxu0  ;;  %v1781_v62 = vsel %vm1024_vm4, %v1726_v53, -inf }
 0xa5b   : > { %1782 = vmax.xlane.f32.xlu0 %v1781_v62  ;;  %v1778_v63 = vpop.f32.mrb[34].mxu0 }
 0xa5c   : > { %v2694_v0 = vpop.f32.mrb[35].mxu0  ;;  %v1784_v1 = vsel %vm1024_vm4, %v1776_v58, -inf }
 0xa5d   : > { %1785 = vmax.xlane.f32.xlu1 %v1784_v1 }
 0xa6e   : > { %1853 = vrot.lane.b32.xlu1 %v3179_v8, %s2913_s17 }
 0xa72   : > { %2788 = vrot.lane.b32.xlu1 %v2787_v52, %s2914_s30 }
 0xa76   : > { %2793 = vrot.lane.b32.xlu1 %v2792_v45, %s2915_s2  ;;  %s3488_s2 = sld [smem:[#allocation13_spill]] (!%p2542_p5) }
 0xae8   : > { %v1783_v13 = vpop.xlane.xlu0 %1782 }
 0xae9   : > { %v1787_v2 = vsub.f32 %v1726_v53, %v1783_v13 }
 0xaea   : > { %v1786_v3 = vpop.xlane.xlu1 %1785 }
 0xaeb   : > { %v1789_v4 = vmul.f32 1.442695, %v1787_v2  ;;  %v1788_v6 = vsub.f32 %v1776_v58, %v1786_v3  ;;  %v2806_v2 = vld [vmem:[%s3065_s6] sm:$0xff]   ;;  %v2807_v3 = vld [vmem:[%s3065_s6 + $0x8] sm:$0xff]  }
 0xaed   : > { %2844 = vpow2.f32 %v1789_v4  ;;  %v1791_v7 = vmul.f32 1.442695, %v1788_v6 }
 0xaee   : > { %v1854_v9 = vpop.permute.xlu1 %1853 }
 0xaef   : > { %2846 = vpow2.f32 %v1791_v7  ;;  %v1859_v10 = vsel %vm1149_vm5, %v1854_v9, 0 }
 0xaf0   : > { %2702 = vmatpush3.bf16.msra.mxu0 %v1859_v10 }
 0xaf1   : > { %2715 = vmatprep.subr.bf16.mxu0 %v2901_v35 }
 0xaf2   : > { %v2789_v34 = vpop.permute.xlu1 %2788 }
 0xaf3   : > { %v2791_v37 = vunpack.i.h.bf16 %v2789_v34  ;;  %v2790_v38 = vunpack.i.l.bf16 %v2789_v34  ;;  %v2811_v34 = vld [vmem:[%s3075_s1 + $0x18] sm:$0xff]  }
 0xaf5   : > { %v1926_v42 = vsel %vm1024_vm4, %v3234_v61, %v2791_v37  ;;  %v1925_v43 = vsel %vm1024_vm4, %v3232_v57, %v2790_v38  ;;  %v2523_v61 = vld [vmem:[%s3486_s26] ss:$0 sm:$0xff]  ;;  %v2813_v37 = vld [vmem:[%s3075_s1 + $0x28] sm:$0xff]   ;;  %v2814_v38 = vld [vmem:[%s3075_s1 + $0x30] sm:$0xff]  }
 0xaf6   : > { %v2794_v36 = vpop.permute.xlu1 %2793 }
 0xaf7   : > { %v2845_v8 = vpop.eup %2844  ;;  %v2796_v39 = vunpack.i.h.bf16 %v2794_v36  ;;  %v2795_v40 = vunpack.i.l.bf16 %v2794_v36  ;;  %v2812_v36 = vld [vmem:[%s3075_s1 + $0x20] sm:$0xff]  }
 0xaf8   : > { %v1793_v47 = vsel %vm1024_vm4, %v2845_v8, 0.0 }
 0xaf9   : > { %v2847_v51 = vpop.eup %2846  ;;  %1794 = vadd.xlane.f32.xlu0 %v1793_v47  ;;  %v1928_v46 = vsel %vm1927_vm6, %v1925_v43, %v2795_v40  ;;  %v1929_v48 = vsel %vm1927_vm6, %v1926_v42, %v2796_v39  ;;  %v2815_v39 = vld [vmem:[%s3075_s1 + $0x38] sm:$0xff]   ;;  %v2529_v40 = vld [vmem:[%s725_s8] ss:$0 sm:$0xff] }
 0xafa   : > { %v1796_v52 = vsel %vm1024_vm4, %v2847_v51, 0.0 }
 0xafd   : > { %1797 = vadd.xlane.f32.xlu0 %v1796_v52 }
 0xb13   : > { %1805 = vrot.lane.b32.xlu0 %v3177_v5, %s2913_s17  ;;  %s3487_s17 = scalar_lea.vmem %s3458_s15, %s3025_s29 }
 0xb86   : > { %v1795_v11 = vpop.xlane.xlu0 %1794 }
 0xb87   : > { %2848 = vrcp.f32 %v1795_v11 }
 0xb8a   : > { %v1798_v12 = vpop.xlane.xlu0 %1797 }
 0xb8b   : > { %2850 = vrcp.f32 %v1798_v12 }
 0xb8e   : > { %v1806_v14 = vpop.permute.xlu0 %1805 }
 0xb8f   : > { %v1811_v15 = vsel %vm1149_vm5, %v1806_v14, 0 }
 0xb90   : > { %2696 = vmatpush3.bf16.msra.mxu1 %v1811_v15 }
 0xb91   : > { %v2849_v16 = vpop.eup %2848  ;;  %2707 = vmatprep.subr.bf16.mxu1 %v2901_v35 }
 0xb92   : > { %v1801_v17 = vmul.f32 %v2849_v16, %v2845_v8 }
 0xb94   : > { %v1803_v18 = vpack.c.bf16 %v1801_v17, %v1801_v17 }
 0xb95   : > { %v2851_v19 = vpop.eup %2850 }
 0xb96   : > { %v1802_v20 = vmul.f32 %v2851_v19, %v2847_v51  ;;  %2698 = vmatmul.mubr.msk.bf16.vlgmr.msra.gmra.mrb[24].mxu1 %vm1024_vm4, %v1803_v18 }
 0xb97   : > { %2711 = vmatprep.mubr.msk.bf16.mxu1 %vm2902_vm3, %v2901_v35  ;;  %2708 = vmatpush3.bf16.msra.mxu1 %v2804_v21 }
 0xb98   : > { %v1804_v5 = vpack.c.bf16 %v1802_v20, %v1802_v20  ;;  %2709 = vmatprep.subr.bf16.mxu1 %v2901_v35  ;;  %v2527_v20 = vld [vmem:[%s714_s16] ss:$0 sm:$0xff] }
 0xb9a   : > { %2704 = vmatmul.mubr.msk.bf16.vlgmr.msra.gmra.mrb[36].mxu0 %vm1024_vm4, %v1804_v5 }
 0xb9b   : > { %2719 = vmatprep.mubr.msk.bf16.mxu0 %vm2902_vm3, %v2901_v35  ;;  %2710 = vmatpush3.bf16.msra.mxu1 %v2805_v22 }
 0xb9c   : > { %2723 = vmatprep.subr.bf16.mxu1 %v2901_v35  ;;  %2716 = vmatpush3.bf16.msra.mxu0 %v2806_v2 }
 0xb9d   : > { %2717 = vmatprep.subr.bf16.mxu0 %v2901_v35 }
 0xba0   : > { %2718 = vmatpush3.bf16.msra.mxu0 %v2807_v3  ;;  %v2533_v3 = vld [vmem:[%s3487_s17] ss:$0 sm:$0xff] }
 0xc69   : > { %v1847_v23 = vpop.f32.mrb[24].mxu1 }
 0xc6a   : > { %v2699_v24 = vpop.f32.mrb[25].mxu1 }
 0xc6b   : > { %v1850_v25 = vpop.f32.mrb[26].mxu1  ;;  %v2528_v24 = vld [vmem:[%s717_s24] ss:$0 sm:$0xff] }
 0xc6c   : > { %v2700_v28 = vpop.f32.mrb[27].mxu1 }
 0xc6d   : > { %v1895_v29 = vpop.f32.mrb[36].mxu0 }
 0xc6e   : > { %v2797_v30 = vpack.i.bf16 %v1895_v29, %v1847_v23  ;;  %v2705_v31 = vpop.f32.mrb[37].mxu0 }
 0xc6f   : > { %v1898_v32 = vpop.f32.mrb[38].mxu0  ;;  %v2808_v31 = vld [vmem:[%s3075_s1] sm:$0xff]  }
 0xc70   : > { %2798 = vrot.lane.b32.xlu0 %v2797_v30, %s2916_s21  ;;  %v2706_v33 = vpop.f32.mrb[39].mxu0  ;;  %v2809_v32 = vld [vmem:[%s3075_s1 + $0x8] sm:$0xff]  }
 0xc71   : > { %v2810_v33 = vld [vmem:[%s3075_s1 + $0x10] sm:$0xff]  }
 0xce2   : > { %v2799_v41 = vpop.permute.xlu0 %2798 }
 0xce3   : > { %v2801_v44 = vunpack.i.h.bf16 %v2799_v41  ;;  %v2800_v45 = vunpack.i.l.bf16 %v2799_v41 }
 0xce5   : > { %v1932_v49 = vsel %vm1930_vm7, %v1929_v48, %v2801_v44  ;;  %v1931_v50 = vsel %vm1930_vm7, %v1928_v46, %v2800_v45 }
 0xce6   : > { %v1933_v53 = vpack.c.bf16 %v1932_v49, %v1931_v50 }
 0xce8   : > { %2712 = vmatmul.mubr.msk.bf16.vlgmr.msra.gmra.mrb[28].mxu1 %vm896_vm2, %v1933_v53 }
 0xce9   : > { %2739 = vmatprep.mubr.msk.bf16.mxu1 %vm2902_vm3, %v2901_v35  ;;  %2724 = vmatpush3.bf16.msra.mxu1 %v2808_v31  ;;  %v2543_v31 = vld [vmem:[%s3488_s2] ss:$0 sm:$0xff] (!%p2542_p5) }
 0xcea   : > { %2725 = vmatprep.subr.bf16.mxu1 %v2901_v35 }
 0xced   : > { %2726 = vmatpush3.bf16.msra.mxu1 %v2809_v32 }
 0xcee   : > { %2727 = vmatprep.subr.bf16.mxu1 %v2901_v35 }
 0xcf1   : > { %2728 = vmatpush3.bf16.msra.mxu1 %v2810_v33 }
 0xcf2   : > { %2729 = vmatprep.subr.bf16.mxu1 %v2901_v35 }
 0xcf5   : > { %2730 = vmatpush3.bf16.msra.mxu1 %v2811_v34 }
 0xcf6   : > { %2731 = vmatprep.subr.bf16.mxu1 %v2901_v35 }
 0xcf9   : > { %2732 = vmatpush3.bf16.msra.mxu1 %v2812_v36  ;;  %v2544_v36 = vld [vmem:[%s3489_s20] ss:$0 sm:$0xff] (!%p2542_p5) }
 0xcfa   : > { %2733 = vmatprep.subr.bf16.mxu1 %v2901_v35 }
 0xcfd   : > { %2734 = vmatpush3.bf16.msra.mxu1 %v2813_v37 }
 0xcfe   : > { %2735 = vmatprep.subr.bf16.mxu1 %v2901_v35 }
 0xd01   : > { %2736 = vmatpush3.bf16.msra.mxu1 %v2814_v38 }
 0xd02   : > { %2737 = vmatprep.subr.bf16.mxu1 %v2901_v35 }
 0xd05   : > { %2738 = vmatpush3.bf16.msra.mxu1 %v2815_v39 }
 0xdbb   : > { %v1994_v54 = vpop.f32.mrb[28].mxu1 }
 0xdbc   : > { %v1995_v55 = vadd.f32 %v2523_v61, %v1994_v54  ;;  %v2713_v57 = vpop.f32.mrb[29].mxu1 }
 0xdbd   : > { %v1997_v56 = vpop.f32.mrb[30].mxu1 }
 0xdbe   : > { %v3344_v58 = vadd.f32 %v1995_v55, %v3133_v26  ;;  %v1998_v59 = vadd.f32 %v2523_v61, %v1997_v56  ;;  %v2714_v60 = vpop.f32.mrb[31].mxu1 }
 0xdc0   : > { %v3347_v62 = vadd.f32 %v1998_v59, %v3135_v27  ;;  %v2005_v63 = vsel %vm896_vm2, %v3344_v58, 0.0  ;;  %v2013_v1 = vmul.f32 %v3344_v58, %v3344_v58 }
 0xdc1   : > { %2006 = vadd.xlane.f32.xlu1 %v2005_v63 }
 0xdc2   : > { %v2008_v0 = vsel %vm896_vm2, %v3347_v62, 0.0  ;;  %v2015_v26 = vsel %vm896_vm2, %v2013_v1, 0.0  ;;  %v2014_v13 = vmul.f32 %v3347_v62, %v3347_v62 }
 0xdc3   : > { %2009 = vadd.xlane.f32.xlu0 %v2008_v0 }
 0xdc4   : > { %v2018_v27 = vsel %vm896_vm2, %v2014_v13, 0.0 }
 0xdc7   : > { %2016 = vadd.xlane.f32.xlu0 %v2015_v26 }
 0xdcb   : > { %2019 = vadd.xlane.f32.xlu0 %v2018_v27 }
 0xe4e   : > { %v2007_v4 = vpop.xlane.xlu1 %2006 }
 0xe4f   : > { %v2011_v7 = vmul.f32 0.03125, %v2007_v4 }
 0xe50   : > { %v2010_v6 = vpop.xlane.xlu0 %2009 }
 0xe51   : > { %v2023_v10 = vmul.f32 %v2011_v7, %v2011_v7  ;;  %v2012_v8 = vmul.f32 0.03125, %v2010_v6  ;;  %v2027_v17 = vsub.f32 %v3344_v58, %v2011_v7 }
 0xe53   : > { %v2024_v11 = vmul.f32 %v2012_v8, %v2012_v8  ;;  %v2028_v5 = vsub.f32 %v3347_v62, %v2012_v8 }
 0xe54   : > { %v2017_v9 = vpop.xlane.xlu0 %2016 }
 0xe55   : > { %v2021_v47 = vmul.f32 0.03125, %v2017_v9 }
 0xe57   : > { %v2025_v51 = vsub.f32 %v2021_v47, %v2023_v10 }
 0xe58   : > { %v2020_v52 = vpop.xlane.xlu0 %2019 }
 0xe59   : > { %v2029_v12 = vadd.f32 1e-06, %v2025_v51  ;;  %v2022_v14 = vmul.f32 0.03125, %v2020_v52 }
 0xe5b   : > { %2852 = vrsqrt.f32 %v2029_v12  ;;  %v2026_v15 = vsub.f32 %v2022_v14, %v2024_v11 }
 0xe5d   : > { %v2030_v16 = vadd.f32 1e-06, %v2026_v15 }
 0xe5f   : > { %2854 = vrsqrt.f32 %v2030_v16 }
 0xe65   : > { %v2853_v18 = vpop.eup %2852 }
 0xe66   : > { %v2033_v19 = vmul.f32 %v2853_v18, %v2027_v17 }
 0xe68   : > { %v2041_v23 = vmul.f32 %v2527_v20, %v2033_v19 }
 0xe69   : > { %v2855_v21 = vpop.eup %2854 }
 0xe6a   : > { %v2034_v22 = vmul.f32 %v2855_v21, %v2028_v5  ;;  %v2049_v28 = vadd.f32 %v2528_v24, %v2041_v23 }
 0xe6c   : > { %v2042_v25 = vmul.f32 %v2527_v20, %v2034_v22 }
 0xe6e   : > { %v2050_v29 = vadd.f32 %v2528_v24, %v2042_v25 }
 0xe70   : > { %v2051_v30 = vpack.c.bf16 %v2050_v29, %v2049_v28 }
 0xe72   : > { %2720 = vmatmul.mubr.msk.bf16.vlgmr.msra.gmra.mrb[40].mxu0 %vm896_vm2, %v2051_v30 }
 0xf45   : > { %v2112_v41 = vpop.f32.mrb[40].mxu0 }
 0xf46   : > { %v2113_v42 = vadd.f32 %v2529_v40, %v2112_v41  ;;  %v2721_v43 = vpop.f32.mrb[41].mxu0 }
 0xf47   : > { %v2115_v44 = vpop.f32.mrb[42].mxu0 }
 0xf48   : > { %v2121_v45 = vmul.f32 %v2113_v42, %v2113_v42  ;;  %v2116_v46 = vadd.f32 %v2529_v40, %v2115_v44  ;;  %v2722_v48 = vpop.f32.mrb[43].mxu0  ;;  %v2119_v0 = vmul.f32 0.5, %v2113_v42 }
 0xf4a   : > { %v2123_v49 = vmul.f32 %v2121_v45, %v2113_v42  ;;  %v2122_v50 = vmul.f32 %v2116_v46, %v2116_v46  ;;  %v2120_v1 = vmul.f32 0.5, %v2116_v46 }
 0xf4c   : > { %v2125_v53 = vmul.f32 0.044715, %v2123_v49  ;;  %v2124_v61 = vmul.f32 %v2122_v50, %v2116_v46 }
 0xf4e   : > { %v2127_v54 = vadd.f32 %v2125_v53, %v2113_v42  ;;  %v2126_v55 = vmul.f32 0.044715, %v2124_v61 }
 0xf50   : > { %v2129_v35 = vmul.f32 0.7978846, %v2127_v54  ;;  %v2128_v57 = vadd.f32 %v2126_v55, %v2116_v46 }
 0xf52   : > { %2856 = vtanh.f32 %v2129_v35  ;;  %v2130_v56 = vmul.f32 0.7978846, %v2128_v57 }
 0xf54   : > { %2858 = vtanh.f32 %v2130_v56 }
 0xf5c   : > { %v2857_v59 = vpop.eup %2856 }
 0xf5d   : > { %v2133_v60 = vadd.f32 1.0, %v2857_v59 }
 0xf5e   : > { %v2859_v63 = vpop.eup %2858 }
 0xf5f   : > { %v2134_v26 = vadd.f32 1.0, %v2859_v63  ;;  %v2135_v13 = vmul.f32 %v2133_v60, %v2119_v0 }
 0xf61   : > { %v2136_v27 = vmul.f32 %v2134_v26, %v2120_v1 }
 0xf63   : > { %v2137_v2 = vpack.c.bf16 %v2136_v27, %v2135_v13 }
 0xf65   : > { %2740 = vmatmul.mubr.bf16.vlgmr.msra.gmra.mrb[32].mxu1 %v2137_v2 }
0x1038   : > { %v2243_v4 = vpop.f32.mrb[32].mxu1 }
0x1039   : > { %v2244_v6 = vadd.f32 %v2533_v3, %v2243_v4  ;;  %v2741_v7 = vpop.f32.mrb[33].mxu1  ;;  %2257 = sbr.rel (%p2542_p5) target bundleno = 4338 (0x10f2), region = 100 }
0x103a   : > { %v2246_v9 = vpop.f32.mrb[34].mxu1 }
0x103b   : > { %v2250_v10 = vadd.f32 %v2244_v6, %v3344_v58  ;;  %v2247_v8 = vadd.f32 %v2533_v3, %v2246_v9  ;;  %v2742_v47 = vpop.f32.mrb[35].mxu1 }
0x103d   : > { %2252 = vst.msk [vmem:[#allocation2] sm:$0xff] %vm896_vm2, %v2250_v10  ;;  %v2251_v51 = vadd.f32 %v2247_v8, %v3347_v62  ;;  %v2271_v11 = vmul.f32 (!%p2542_p5), %v2250_v10, %v2250_v10 }
0x103f   : > { %2253 = vst.msk [vmem:[#allocation2 + $0x8] sm:$0xff] %vm896_vm2, %v2251_v51  ;;  %v2262_v52 = vrot.slane (!%p2542_p5), %v2251_v51, 7  ;;  %v2272_v12 = vmul.f32 (!%p2542_p5), %v2251_v51, %v2251_v51 }
0x1041   : > { %v2264_v14 = vsel %vm2263_vm8, %v2262_v52, %v2250_v10  ;;  %v2275_v15 = vrot.slane %v2272_v12, 7 }
0x1042   : > { %v2267_v58 = vsel %vm2266_vm9, %v2264_v14, 0.0 }
0x1043   : > { %2268 = vadd.xlane.f32.xlu0 %v2267_v58  ;;  %v2276_v16 = vsel %vm2263_vm8, %v2275_v15, %v2271_v11 }
0x1044   : > { %v2278_v62 = vsel %vm2266_vm9, %v2276_v16, 0.0 }
0x1047   : > { %2279 = vadd.xlane.f32.xlu0 %v2278_v62 }
0x10d0   : > { %v2269_v17 = vpop.xlane.xlu0 %2268 }
0x10d1   : > { %v2270_v18 = vmul.f32 0.03125, %v2269_v17 }
0x10d3   : > { %v2282_v20 = vmul.f32 %v2270_v18, %v2270_v18  ;;  %v2285_v23 = vrot.slane %v2270_v18, 1  ;;  %v2288_v24 = vsub.f32 %v2250_v10, %v2270_v18 }
0x10d4   : > { %v2280_v19 = vpop.xlane.xlu0 %2279 }
0x10d5   : > { %v2281_v5 = vmul.f32 0.03125, %v2280_v19  ;;  %v2289_v28 = vsub.f32 %v2251_v51, %v2285_v23 }
0x10d7   : > { %v2283_v21 = vsub.f32 %v2281_v5, %v2282_v20 }
0x10d9   : > { %v2290_v22 = vadd.f32 1e-06, %v2283_v21 }
0x10db   : > { %2860 = vrsqrt.f32 %v2290_v22 }
0x10e5   : > { %v2861_v25 = vpop.eup %2860 }
0x10e6   : > { %v2293_v29 = vrot.slane %v2861_v25, 1  ;;  %v2296_v30 = vmul.f32 %v2861_v25, %v2288_v24 }
0x10e8   : > { %v2297_v32 = vmul.f32 %v2293_v29, %v2289_v28  ;;  %v2304_v33 = vmul.f32 %v2543_v31, %v2296_v30 }
0x10ea   : > { %v2305_v34 = vmul.f32 %v2543_v31, %v2297_v32  ;;  %v2312_v38 = vadd.f32 %v2544_v36, %v2304_v33 }
0x10ec   : > { %v2313_v37 = vadd.f32 %v2544_v36, %v2305_v34 }
0x10ee   : > { %v2316_v39 = vrot.slane %v2313_v37, 7 }
0x10f0   : > { %v2317_v40 = vsel %vm2263_vm8, %v2316_v39, %v2312_v38 }
0x10f1   : > { %2319 = vst.msk [vmem:[#allocation3] sm:$0x3] %vm2266_vm9, %v2317_v40 }
0x10f2 PF: > { %p2747_p6 = scmp.eq.s32.totalorder %s3019_s28, 1  ;;  %s2917_s22 = smov [#allocation3]  }
0x10f3   : > { %s2327_s26 = sshll.u32 %s2917_s22, 4  ;;  %s2328_s26 = int_to_ptr.vmem [resolvable:$true] %s2327_s26 }
0x10f4   : > { %s2862_s6 = scalar_lea.vmem %s2328_s26, 32  ;;  %p2869_p10 = scmp.lt.s32.totalorder %s2328_s26, %s2328_s26 }
0x10f5   : > { %p2863_p7 = scmp.ne.s32.totalorder %s2328_s26, %s2862_s6  ;;  %p2870_p11 = scmp.lt.s32.totalorder %s2862_s6, %s2862_s6 }
0x10f7   : > { %p2864_p8 = pnand %p2863_p7, %p2747_p6  ;;  %p2871_p12 = por %p2870_p11, %p2869_p10 }
0x10f9   : > { %p2865_p9 = pneg %p2864_p8 }
0x10fb   : > { %p2872_p13 = pnand %p2871_p12, %p2865_p9 }
0x10fd   : > { %2875 = shalt.err (!%p2872_p13)
}
0x10fe   : > { %s3490_s0 = sld [smem:[#allocation15_spill]] }
0x1104   : > { %s2876_s16 = scalar_lea.hbm %s3490_s0, 32 }
0x1105   : > { %p2877_p0 = scmp.ne.s32.totalorder %s3490_s0, %s2876_s16  ;;  %p2882_p3 = scmp.lt.u32.totalorder %s2876_s16, %s3490_s0 }
0x1107   : > { %p2878_p1 = pnand %p2877_p0, %p2747_p6 }
0x1109   : > { %p2879_p2 = pneg %p2878_p1 }
0x110b   : > { %p2884_p4 = pnand %p2882_p3, %p2879_p2 }
0x110d   : > { %2887 = shalt.err (!%p2884_p4)
}
0x110e   : > { %2744 = dma.vmem_to_hbm [thread:$0]  (%p2747_p6), %s2328_s26, 32, %s3490_s0, [#allocation4]  }
0x110f   : > { %2893 = dma.done.wait (%p2747_p6), [#allocation4], 32  }
0x1110   : > { %2895 = vsyncadd (%p2747_p6), [#allocation4], 4294967264 }
0x1111 PF: > { %s3491_s2 = sld [smem:[#allocation6_spill]] }
0x1117   : > { %s29_s27 = sadd.s32 1, %s3491_s2  }
0x1118   : > { %p26_p5 = scmp.ge.s32.totalorder %s29_s27, 4  }
0x111a   :  { %28 = sbr.rel (!%p26_p5) target bundleno = 10 (0xa), region = 160 }
0x1121   :  { %2340 = vsyncpa [#allocation4], 1 }
0x1122   :  { %2342 = vsyncpa [#allocation4 + $0x1], 1 }

</bundles_post_ra>
